<compile_context>
chip_gen: v7x
topology: tpu7x:2x2x1
jax: 0.10.0
libtpu: 0.0.40
codegen_flags: <defaults>
</compile_context>

<pallas_src>
import functools

import numpy as np
import jax
import jax.numpy as jnp
from jax.experimental import pallas as pl
from jax.experimental.pallas import tpu as pltpu

EPS = 1e-5                     # PyTorch nn.LayerNorm default eps
MXU_DTYPE = jnp.bfloat16       # dtype fed to the MXU; accumulation is always f32.
                               # Set to jnp.float32 for exact-f32 parity (weights stay f32 in params).
LANES = 128


# ------------------------------ in-kernel math helpers ------------------------------

def _mxu(x):
    """Cast an MXU operand (accumulation stays f32 via preferred_element_type)."""
    return x.astype(MXU_DTYPE)


def _layernorm(x, g, b):
    """PyTorch-style LayerNorm (biased variance), statistics in f32."""
    x = x.astype(jnp.float32)
    mu = jnp.mean(x, axis=-1, keepdims=True)
    var = jnp.mean((x - mu) ** 2, axis=-1, keepdims=True)
    return (x - mu) * jax.lax.rsqrt(var + EPS) * g + b


def _erf(x):
    # Abramowitz & Stegun 7.1.26 (max abs err ~1.5e-7) -- exp/mul/add only, so it always
    # lowers in Mosaic.  TODO(synk): tanh-form GELU would move this work to the EUP on
    # v6e/v7x, but differs numerically from PyTorch's exact-erf nn.GELU().
    p = 0.3275911
    a1, a2, a3, a4, a5 = 0.254829592, -0.284496736, 1.421413741, -1.453152027, 1.061405429
    ax = jnp.abs(x)
    t = 1.0 / (1.0 + p * ax)
    poly = ((((a5 * t + a4) * t + a3) * t + a2) * t + a1) * t
    y = 1.0 - poly * jnp.exp(-ax * ax)
    return jnp.where(x >= 0, y, -y)


def _gelu_exact(x):
    """Exact (erf) GELU matching PyTorch nn.GELU() default, computed in f32."""
    return 0.5 * x * (1.0 + _erf(x * 0.7071067811865476))


def _derive_vmem_limit(blocks, scratch=()):
    """VMEM budget from actual block sizes: 2x (double buffering) + scratch, 4x margin
    for tile padding of small blocks, floored at 4 MiB, capped at 64 MiB (v7x physical;
    raise toward 96-128 MiB on v5e/v6e at production sizes)."""
    def nbytes(shape, dtype):
        return int(np.prod(shape)) * np.dtype(dtype).itemsize
    raw = 2 * sum(nbytes(s, d) for s, d in blocks) + sum(nbytes(s, d) for s, d in scratch)
    return int(min(64 << 20, max(4 << 20, 4 * raw)))


# ----------------------------------- Pallas kernels -----------------------------------

def _patch_embed_kernel(x_ref, g1_ref, b1_ref, w_ref, bias_ref, g2_ref, b2_ref,
                        pos_ref, o_ref):
    """Fused patch embedding for one batch element: LN -> Linear -> LN -> +pos."""
    y = _layernorm(x_ref[0], g1_ref[...], b1_ref[...])                       # (n, patch_dim)
    y = jnp.dot(_mxu(y), w_ref[...], preferred_element_type=jnp.float32) + bias_ref[...]
    y = _layernorm(y, g2_ref[...], b2_ref[...])                              # (n, D)
    o_ref[0] = y + pos_ref[0]


def _transformer_kernel(x_ref,
                        ln1g_ref, ln1b_ref, wq_ref, wk_ref, wv_ref, wo_ref, bo_ref,
                        ln2g_ref, ln2b_ref, w1_ref, b1_ref, w2_ref, b2_ref,
                        hg_ref, hb_ref, hw_ref, hbias_ref,
                        o_ref, x_sc,
                        *, heads, scale):
    """One (batch, layer) grid step: full transformer layer on the resident residual
    stream; at the last layer the classifier head is applied and the logits stored."""
    l = pl.program_id(1)
    n_layers = pl.num_programs(1)

    @pl.when(l == 0)
    def _():                                                # load tokens once per batch elem
        x_sc[...] = x_ref[0].astype(jnp.float32)

    x = x_sc[...]                                           # (N, D) f32 residual stream

    # ----------------------------- attention block -----------------------------
    y = _mxu(_layernorm(x, ln1g_ref[0], ln1b_ref[0]))       # (N, D)
    yb = jnp.broadcast_to(y, (heads,) + y.shape)            # (H, N, D) batched over heads
    q = jnp.einsum('hnd,hdk->hnk', yb, wq_ref[0], preferred_element_type=jnp.float32)
    k = jnp.einsum('hnd,hdk->hnk', yb, wk_ref[0], preferred_element_type=jnp.float32)
    v = jnp.einsum('hnd,hdk->hnk', yb, wv_ref[0], preferred_element_type=jnp.float32)
    q = q * scale                                           # scale folded into Q
    s = jnp.einsum('hqd,hkd->hqk', _mxu(q), _mxu(k),
                   preferred_element_type=jnp.float32)      # (H, N, N)
    m = jnp.max(s, axis=-1, keepdims=True)
    e = jnp.exp(s - m)                                      # f32 softmax
    p = e / jnp.sum(e, axis=-1, keepdims=True)              # exact division (parity)
    o = jnp.einsum('hqk,hkd->hqd', _mxu(p), _mxu(v),
                   preferred_element_type=jnp.float32)      # (H, N, dh)
    # head merge + out-projection fused:  concat_h(o_h) @ W_out == sum_h o_h @ W_out[h]
    proj = jnp.einsum('hnd,hde->hne', _mxu(o), wo_ref[0],
                      preferred_element_type=jnp.float32)   # (H, N, D)
    x = jnp.sum(proj, axis=0) + bo_ref[0] + x               # residual add

    # ---------------------------- feed-forward block ----------------------------
    y = _mxu(_layernorm(x, ln2g_ref[0], ln2b_ref[0]))
    hmid = jnp.dot(y, w1_ref[0], preferred_element_type=jnp.float32) + b1_ref[0]
    hmid = _gelu_exact(hmid)
    x = jnp.dot(_mxu(hmid), w2_ref[0], preferred_element_type=jnp.float32) + b2_ref[0] + x

    x_sc[...] = x                                           # residual stays resident in VMEM

    # ------------------- classifier head folded into the last step -------------------
    @pl.when(l == n_layers - 1)
    def _():
        cls = x[0:1, :]                                     # cls-token row (1, D)
        yh = _layernorm(cls, hg_ref[...], hb_ref[...])
        o_ref[0] = (jnp.dot(_mxu(yh), hw_ref[...], preferred_element_type=jnp.float32)
                    + hbias_ref[...])                       # (1, C_pad) lane-dense store


# ----------------------------------- kernel wrappers -----------------------------------

def patch_embed(x_patches, g1, b1, w, bias, g2, b2, pos_patch):
    B, n, patch_dim = x_patches.shape
    D = w.shape[1]

    def full_spec(a):
        nd = a.ndim
        return pl.BlockSpec(a.shape, lambda b, _nd=nd: (0,) * _nd)

    consts = (g1, b1, w, bias, g2, b2, pos_patch)
    vmem_limit = _derive_vmem_limit(
        [((1, n, patch_dim), x_patches.dtype)]
        + [(a.shape, a.dtype) for a in consts]
        + [((1, n, D), jnp.float32)])

    return pl.pallas_call(
        _patch_embed_kernel,
        out_shape=jax.ShapeDtypeStruct((B, n, D), jnp.float32),
        grid=(B,),
        in_specs=[pl.BlockSpec((1, n, patch_dim), lambda b: (b, 0, 0))]
                 + [full_spec(a) for a in consts],
        out_specs=pl.BlockSpec((1, n, D), lambda b: (b, 0, 0)),
        compiler_params=pltpu.CompilerParams(
            dimension_semantics=("parallel",), vmem_limit_bytes=vmem_limit),
    )(x_patches, *consts)


def vit_transformer(x, lw, head, *, heads, scale):
    """Whole transformer + classifier head in ONE pallas_call.

    x:    (B, N, D) tokens (cls + patches, pos already added)
    lw:   dict of depth-stacked layer weights (leading depth axis)
    head: dict of classifier-head weights (classes already padded to a lane multiple)
    returns (B, C_pad) logits.
    """
    B, N, D = x.shape
    depth = lw["ln1_g"].shape[0]
    C_pad = head["w"].shape[1]

    layer_args = (lw["ln1_g"], lw["ln1_b"], lw["w_q"], lw["w_k"], lw["w_v"],
                  lw["w_out"], lw["b_out"], lw["ln2_g"], lw["ln2_b"],
                  lw["w_ff1"], lw["b_ff1"], lw["w_ff2"], lw["b_ff2"])
    head_args = (head["g"], head["b"], head["w"], head["bias"])

    def layer_spec(a):       # leading depth axis selected by the layer grid index
        nd = a.ndim
        return pl.BlockSpec((1,) + a.shape[1:],
                            lambda b, l, _nd=nd: (l,) + (0,) * (_nd - 1))

    def const_spec(a):       # resident across the whole grid
        nd = a.ndim
        return pl.BlockSpec(a.shape, lambda b, l, _nd=nd: (0,) * _nd)

    x_spec = pl.BlockSpec((1, N, D), lambda b, l: (b, 0, 0))
    out_spec = pl.BlockSpec((1, 1, C_pad), lambda b, l: (b, 0, 0))
    in_specs = ([x_spec]
                + [layer_spec(a) for a in layer_args]
                + [const_spec(a) for a in head_args])

    blocks = ([((1, N, D), x.dtype)]
              + [((1,) + a.shape[1:], a.dtype) for a in layer_args]
              + [(a.shape, a.dtype) for a in head_args]
              + [((1, 1, C_pad), jnp.float32)])
    vmem_limit = _derive_vmem_limit(blocks, scratch=[((N, D), jnp.float32)])

    kern = functools.partial(_transformer_kernel, heads=heads, scale=scale)
    out = pl.pallas_call(
        kern,
        out_shape=jax.ShapeDtypeStruct((B, 1, C_pad), jnp.float32),
        grid=(B, depth),
        in_specs=in_specs,
        out_specs=out_spec,
        scratch_shapes=[pltpu.VMEM((N, D), jnp.float32)],   # resident residual stream
        compiler_params=pltpu.CompilerParams(
            dimension_semantics=("parallel", "arbitrary"),
            vmem_limit_bytes=vmem_limit),
    )(x, *layer_args, *head_args)
    return out[:, 0, :]                                     # (B, C_pad)


# ------------------------------------ parameter init ------------------------------------

def init_params(key, *, patch_dim, dim, depth, heads, dim_head, mlp_dim,
                num_patches, num_classes):
    """All parameters stored in float32 (cast to MXU_DTYPE only at the call boundary)."""
    inner = heads * dim_head
    kit = iter(jax.random.split(key, 64))
    nk = lambda: next(kit)

    def dense(*shape):
        fan_in = shape[-2]
        return jax.random.normal(nk(), shape, jnp.float32) * (fan_in ** -0.5)

    def bias(*shape): return jax.random.normal(nk(), shape, jnp.float32) * 0.02
    def ln_g(*shape): return 1.0 + jax.random.normal(nk(), shape, jnp.float32) * 0.02
    def ln_b(*shape): return jax.random.normal(nk(), shape, jnp.float32) * 0.02

    # to_qkv (bias=False): columns ordered [q | k | v], each head-major (h, dh).
    w_qkv = dense(depth, dim, 3 * inner).reshape(depth, dim, 3, heads, dim_head)
    w_q = w_qkv[:, :, 0].transpose(0, 2, 1, 3)               # (depth, heads, D, dh)
    w_k = w_qkv[:, :, 1].transpose(0, 2, 1, 3)
    w_v = w_qkv[:, :, 2].transpose(0, 2, 1, 3)
    w_out = dense(depth, inner, dim).reshape(depth, heads, dim_head, dim)

    return {
        "patch_ln1_g": ln_g(1, patch_dim), "patch_ln1_b": ln_b(1, patch_dim),
        "patch_w": dense(patch_dim, dim), "patch_b": bias(1, dim),
        "patch_ln2_g": ln_g(1, dim), "patch_ln2_b": ln_b(1, dim),
        "pos_embedding": jax.random.normal(nk(), (1, num_patches + 1, dim), jnp.float32),
        "cls_token": jax.random.normal(nk(), (1, 1, dim), jnp.float32),
        "head_ln_g": ln_g(1, dim), "head_ln_b": ln_b(1, dim),
        "head_w": dense(dim, num_classes), "head_b": bias(1, num_classes),
        "layers": {                                          # depth-stacked layer weights
            "ln1_g": ln_g(depth, 1, dim), "ln1_b": ln_b(depth, 1, dim),
            "w_q": w_q, "w_k": w_k, "w_v": w_v,
            "w_out": w_out, "b_out": bias(depth, 1, dim),
            "ln2_g": ln_g(depth, 1, dim), "ln2_b": ln_b(depth, 1, dim),
            "w_ff1": dense(depth, dim, mlp_dim), "b_ff1": bias(depth, 1, mlp_dim),
            "w_ff2": dense(depth, mlp_dim, dim), "b_ff2": bias(depth, 1, dim),
        },
    }


# -------------------------------------- forward pass --------------------------------------

def vit_forward(params, img, *, patch_size, heads, dim_head):
    B, C, H, W = img.shape
    p1, p2 = patch_size
    h, w = H // p1, W // p2
    n = h * w
    D = params["patch_w"].shape[1]
    scale = dim_head ** (-0.5)
    mxu = lambda a: a.astype(MXU_DTYPE)      # cast matmul weights at the boundary only

    # Rearrange 'b c (h p1) (w p2) -> b (h w) (p1 p2 c)'  (pure layout glue, kept in XLA)
    x = img.reshape(B, C, h, p1, w, p2).transpose(0, 2, 4, 3, 5, 1).reshape(B, n, p1 * p2 * C)
    pos = params["pos_embedding"][:, : n + 1]

    # Fused patch embedding (LN -> Linear -> LN -> +pos) over the patch tokens.
    tokens = patch_embed(x, params["patch_ln1_g"], params["patch_ln1_b"],
                         mxu(params["patch_w"]), params["patch_b"],
                         params["patch_ln2_g"], params["patch_ln2_b"],
                         pos[:, 1:])                                         # (B, n, D)

    # cls-token row (+ its positional embedding); tiny (B,1,D) concat kept in XLA.
    cls_row = jnp.broadcast_to(params["cls_token"] + pos[:, :1], (B, 1, D))
    xt = jnp.concatenate([cls_row, tokens], axis=1)                          # (B, n+1, D)

    # Depth-stacked layer weights, matmul weights cast to the MXU dtype.
    lw = dict(params["layers"])
    for key in ("w_q", "w_k", "w_v", "w_out", "w_ff1", "w_ff2"):
        lw[key] = mxu(lw[key])

    # Classifier head: pad classes to a lane-dense multiple of 128, slice after the call.
    c_real = params["head_w"].shape[1]
    c_pad = max(LANES, ((c_real + LANES - 1) // LANES) * LANES)
    head = {
        "g": params["head_ln_g"], "b": params["head_ln_b"],
        "w": mxu(jnp.pad(params["head_w"], ((0, 0), (0, c_pad - c_real)))),
        "bias": jnp.pad(params["head_b"], ((0, 0), (0, c_pad - c_real))),
    }

    # One fused pallas_call: all transformer layers + classifier head.
    logits_pad = vit_transformer(xt, lw, head, heads=heads, scale=scale)     # (B, c_pad)
    return logits_pad[:, :c_real]


# ------------------------------------------ main ------------------------------------------

if __name__ == "__main__":
    IMAGE_SIZE = (16, 16)
    PATCH_SIZE = (8, 8)
    CHANNELS = 4
    DIM = 32
    DEPTH = 2
    HEADS = 4
    DIM_HEAD = 8
    MLP_DIM = 64
    NUM_CLASSES = 10
    BATCH = 2

    num_patches = (IMAGE_SIZE[0] // PATCH_SIZE[0]) * (IMAGE_SIZE[1] // PATCH_SIZE[1])
    patch_dim = CHANNELS * PATCH_SIZE[0] * PATCH_SIZE[1]

    key = jax.random.PRNGKey(0)
    k_params, k_img = jax.random.split(key)
    params = init_params(
        k_params,
        patch_dim=patch_dim, dim=DIM, depth=DEPTH, heads=HEADS, dim_head=DIM_HEAD,
        mlp_dim=MLP_DIM, num_patches=num_patches, num_classes=NUM_CLASSES,
    )
    img = jax.random.normal(k_img, (BATCH, CHANNELS, IMAGE_SIZE[0], IMAGE_SIZE[1]),
                            jnp.float32)

    fwd = jax.jit(functools.partial(vit_forward, patch_size=PATCH_SIZE,
                                    heads=HEADS, dim_head=DIM_HEAD))
    logits = fwd(params, img)
    jax.block_until_ready(logits)
    assert logits.shape == (BATCH, NUM_CLASSES)
    print("KERNEL_OK")
</pallas_src>

<mosaic_0001>
module attributes {stable_mosaic.version = 11 : i64} {
  func.func @_patch_embed_kernel(%arg0: i32, %arg1: memref<1x4x256xf32, #tpu.memory_space<vmem>>, %arg2: memref<1x256xf32, #tpu.memory_space<vmem>>, %arg3: memref<1x256xf32, #tpu.memory_space<vmem>>, %arg4: memref<256x32xbf16, #tpu.memory_space<vmem>>, %arg5: memref<1x32xf32, #tpu.memory_space<vmem>>, %arg6: memref<1x32xf32, #tpu.memory_space<vmem>>, %arg7: memref<1x32xf32, #tpu.memory_space<vmem>>, %arg8: memref<1x4x32xf32, #tpu.memory_space<vmem>>, %arg9: memref<1x4x32xf32, #tpu.memory_space<vmem>>) attributes {dimension_semantics = [#tpu.dimension_semantics<parallel>], iteration_bounds = array<i64: 2>, scalar_prefetch = 0 : i64, scratch_operands = 0 : i64, tpu.core_type = #tpu.core_type<tc>, window_params = [{transform_indices = @transform_0, window_bounds = array<i64: 1, 4, 256>}, {pipeline_mode = #tpu.pipeline_mode<synchronous>, transform_indices = @transform_1, window_bounds = array<i64: 1, 256>}, {pipeline_mode = #tpu.pipeline_mode<synchronous>, transform_indices = @transform_2, window_bounds = array<i64: 1, 256>}, {pipeline_mode = #tpu.pipeline_mode<synchronous>, transform_indices = @transform_3, window_bounds = array<i64: 256, 32>}, {pipeline_mode = #tpu.pipeline_mode<synchronous>, transform_indices = @transform_4, window_bounds = array<i64: 1, 32>}, {pipeline_mode = #tpu.pipeline_mode<synchronous>, transform_indices = @transform_5, window_bounds = array<i64: 1, 32>}, {pipeline_mode = #tpu.pipeline_mode<synchronous>, transform_indices = @transform_6, window_bounds = array<i64: 1, 32>}, {pipeline_mode = #tpu.pipeline_mode<synchronous>, transform_indices = @transform_7, window_bounds = array<i64: 1, 4, 32>}, {transform_indices = @transform_8, window_bounds = array<i64: 1, 4, 32>}]} {
    %c0 = arith.constant 0 : index
    %c0_0 = arith.constant 0 : index
    %c0_1 = arith.constant 0 : index
    %0 = vector.load %arg1[%c0, %c0_0, %c0_1] : memref<1x4x256xf32, #tpu.memory_space<vmem>>, vector<1x4x256xf32>
    %1 = vector.shape_cast %0 : vector<1x4x256xf32> to vector<4x256xf32>
    %c0_2 = arith.constant 0 : index
    %c0_3 = arith.constant 0 : index
    %2 = vector.load %arg2[%c0_2, %c0_3] : memref<1x256xf32, #tpu.memory_space<vmem>>, vector<1x256xf32>
    %c0_4 = arith.constant 0 : index
    %c0_5 = arith.constant 0 : index
    %3 = vector.load %arg3[%c0_4, %c0_5] : memref<1x256xf32, #tpu.memory_space<vmem>>, vector<1x256xf32>
    %cst = arith.constant dense<0.000000e+00> : vector<4xf32>
    %4 = vector.multi_reduction <add>, %1, %cst [1] : vector<4x256xf32> to vector<4xf32>
    %5 = vector.shape_cast %4 : vector<4xf32> to vector<4x1xf32>
    %cst_6 = arith.constant 2.560000e+02 : f32
    %6 = vector.broadcast %cst_6 : f32 to vector<4x1xf32>
    %7 = arith.divf %5, %6 : vector<4x1xf32>
    %8 = vector.broadcast %7 : vector<4x1xf32> to vector<4x256xf32>
    %9 = arith.subf %1, %8 : vector<4x256xf32>
    %10 = arith.mulf %9, %9 : vector<4x256xf32>
    %cst_7 = arith.constant dense<0.000000e+00> : vector<4xf32>
    %11 = vector.multi_reduction <add>, %10, %cst_7 [1] : vector<4x256xf32> to vector<4xf32>
    %12 = vector.shape_cast %11 : vector<4xf32> to vector<4x1xf32>
    %cst_8 = arith.constant 2.560000e+02 : f32
    %13 = vector.broadcast %cst_8 : f32 to vector<4x1xf32>
    %14 = arith.divf %12, %13 : vector<4x1xf32>
    %15 = vector.broadcast %7 : vector<4x1xf32> to vector<4x256xf32>
    %16 = arith.subf %1, %15 : vector<4x256xf32>
    %cst_9 = arith.constant 9.99999974E-6 : f32
    %17 = vector.broadcast %cst_9 : f32 to vector<4x1xf32>
    %18 = arith.addf %14, %17 : vector<4x1xf32>
    %19 = math.rsqrt %18 : vector<4x1xf32>
    %20 = vector.broadcast %19 : vector<4x1xf32> to vector<4x256xf32>
    %21 = arith.mulf %16, %20 : vector<4x256xf32>
    %22 = vector.broadcast %2 : vector<1x256xf32> to vector<4x256xf32>
    %23 = arith.mulf %21, %22 : vector<4x256xf32>
    %24 = vector.broadcast %3 : vector<1x256xf32> to vector<4x256xf32>
    %25 = arith.addf %23, %24 : vector<4x256xf32>
    %26 = arith.truncf %25 : vector<4x256xf32> to vector<4x256xbf16>
    %c0_10 = arith.constant 0 : index
    %c0_11 = arith.constant 0 : index
    %27 = vector.load %arg4[%c0_10, %c0_11] : memref<256x32xbf16, #tpu.memory_space<vmem>>, vector<256x32xbf16>
    %cst_12 = arith.constant dense<0.000000e+00> : vector<4x32xf32>
    %28 = tpu.matmul %26, %27, %cst_12 {dimension_numbers = #tpu.dot_dimension_numbers<[1], [0], [0], [1], [0, 0, 1, 1], [], []>} : vector<4x256xbf16>, vector<256x32xbf16>, vector<4x32xf32> -> vector<4x32xf32>
    %c0_13 = arith.constant 0 : index
    %c0_14 = arith.constant 0 : index
    %29 = vector.load %arg5[%c0_13, %c0_14] : memref<1x32xf32, #tpu.memory_space<vmem>>, vector<1x32xf32>
    %30 = vector.broadcast %29 : vector<1x32xf32> to vector<4x32xf32>
    %31 = arith.addf %28, %30 : vector<4x32xf32>
    %c0_15 = arith.constant 0 : index
    %c0_16 = arith.constant 0 : index
    %32 = vector.load %arg6[%c0_15, %c0_16] : memref<1x32xf32, #tpu.memory_space<vmem>>, vector<1x32xf32>
    %c0_17 = arith.constant 0 : index
    %c0_18 = arith.constant 0 : index
    %33 = vector.load %arg7[%c0_17, %c0_18] : memref<1x32xf32, #tpu.memory_space<vmem>>, vector<1x32xf32>
    %cst_19 = arith.constant dense<0.000000e+00> : vector<4xf32>
    %34 = vector.multi_reduction <add>, %31, %cst_19 [1] : vector<4x32xf32> to vector<4xf32>
    %35 = vector.shape_cast %34 : vector<4xf32> to vector<4x1xf32>
    %cst_20 = arith.constant 3.200000e+01 : f32
    %36 = vector.broadcast %cst_20 : f32 to vector<4x1xf32>
    %37 = arith.divf %35, %36 : vector<4x1xf32>
    %38 = vector.broadcast %37 : vector<4x1xf32> to vector<4x32xf32>
    %39 = arith.subf %31, %38 : vector<4x32xf32>
    %40 = arith.mulf %39, %39 : vector<4x32xf32>
    %cst_21 = arith.constant dense<0.000000e+00> : vector<4xf32>
    %41 = vector.multi_reduction <add>, %40, %cst_21 [1] : vector<4x32xf32> to vector<4xf32>
    %42 = vector.shape_cast %41 : vector<4xf32> to vector<4x1xf32>
    %cst_22 = arith.constant 3.200000e+01 : f32
    %43 = vector.broadcast %cst_22 : f32 to vector<4x1xf32>
    %44 = arith.divf %42, %43 : vector<4x1xf32>
    %45 = vector.broadcast %37 : vector<4x1xf32> to vector<4x32xf32>
    %46 = arith.subf %31, %45 : vector<4x32xf32>
    %cst_23 = arith.constant 9.99999974E-6 : f32
    %47 = vector.broadcast %cst_23 : f32 to vector<4x1xf32>
    %48 = arith.addf %44, %47 : vector<4x1xf32>
    %49 = math.rsqrt %48 : vector<4x1xf32>
    %50 = vector.broadcast %49 : vector<4x1xf32> to vector<4x32xf32>
    %51 = arith.mulf %46, %50 : vector<4x32xf32>
    %52 = vector.broadcast %32 : vector<1x32xf32> to vector<4x32xf32>
    %53 = arith.mulf %51, %52 : vector<4x32xf32>
    %54 = vector.broadcast %33 : vector<1x32xf32> to vector<4x32xf32>
    %55 = arith.addf %53, %54 : vector<4x32xf32>
    %c0_24 = arith.constant 0 : index
    %c0_25 = arith.constant 0 : index
    %c0_26 = arith.constant 0 : index
    %56 = vector.load %arg8[%c0_24, %c0_25, %c0_26] : memref<1x4x32xf32, #tpu.memory_space<vmem>>, vector<1x4x32xf32>
    %57 = vector.shape_cast %56 : vector<1x4x32xf32> to vector<4x32xf32>
    %58 = arith.addf %55, %57 : vector<4x32xf32>
    %c0_27 = arith.constant 0 : index
    %c0_28 = arith.constant 0 : index
    %c0_29 = arith.constant 0 : index
    %59 = vector.load %arg9[%c0_27, %c0_28, %c0_29] : memref<1x4x32xf32, #tpu.memory_space<vmem>>, vector<1x4x32xf32>
    %60 = vector.shape_cast %59 : vector<1x4x32xf32> to vector<4x32xf32>
    %61 = vector.shape_cast %58 : vector<4x32xf32> to vector<1x4x32xf32>
    tpu.vector_store %arg9[%c0_27, %c0_28, %c0_29], %61 {strides = array<i32>} : memref<1x4x32xf32, #tpu.memory_space<vmem>>, vector<1x4x32xf32>,
    return
  }
  func.func @transform_0(%arg0: i32) -> (i32, i32, i32) {
    %c0_i32 = arith.constant 0 : i32
    %c0_i32_0 = arith.constant 0 : i32
    %c0_i32_1 = arith.constant 0 : i32
    return %arg0, %c0_i32, %c0_i32_0 : i32, i32, i32
  }
  func.func @transform_1(%arg0: i32) -> (i32, i32) {
    %c0_i32 = arith.constant 0 : i32
    %c0_i32_0 = arith.constant 0 : i32
    %c0_i32_1 = arith.constant 0 : i32
    return %c0_i32, %c0_i32_0 : i32, i32
  }
  func.func @transform_2(%arg0: i32) -> (i32, i32) {
    %c0_i32 = arith.constant 0 : i32
    %c0_i32_0 = arith.constant 0 : i32
    %c0_i32_1 = arith.constant 0 : i32
    return %c0_i32, %c0_i32_0 : i32, i32
  }
  func.func @transform_3(%arg0: i32) -> (i32, i32) {
    %c0_i32 = arith.constant 0 : i32
    %c0_i32_0 = arith.constant 0 : i32
    %c0_i32_1 = arith.constant 0 : i32
    return %c0_i32, %c0_i32_0 : i32, i32
  }
  func.func @transform_4(%arg0: i32) -> (i32, i32) {
    %c0_i32 = arith.constant 0 : i32
    %c0_i32_0 = arith.constant 0 : i32
    %c0_i32_1 = arith.constant 0 : i32
    return %c0_i32, %c0_i32_0 : i32, i32
  }
  func.func @transform_5(%arg0: i32) -> (i32, i32) {
    %c0_i32 = arith.constant 0 : i32
    %c0_i32_0 = arith.constant 0 : i32
    %c0_i32_1 = arith.constant 0 : i32
    return %c0_i32, %c0_i32_0 : i32, i32
  }
  func.func @transform_6(%arg0: i32) -> (i32, i32) {
    %c0_i32 = arith.constant 0 : i32
    %c0_i32_0 = arith.constant 0 : i32
    %c0_i32_1 = arith.constant 0 : i32
    return %c0_i32, %c0_i32_0 : i32, i32
  }
  func.func @transform_7(%arg0: i32) -> (i32, i32, i32) {
    %c0_i32 = arith.constant 0 : i32
    %c0_i32_0 = arith.constant 0 : i32
    %c0_i32_1 = arith.constant 0 : i32
    %c0_i32_2 = arith.constant 0 : i32
    return %c0_i32, %c0_i32_0, %c0_i32_1 : i32, i32, i32
  }
  func.func @transform_8(%arg0: i32) -> (i32, i32, i32) {
    %c0_i32 = arith.constant 0 : i32
    %c0_i32_0 = arith.constant 0 : i32
    %c0_i32_1 = arith.constant 0 : i32
    return %arg0, %c0_i32, %c0_i32_0 : i32, i32, i32
  }
}

module attributes {stable_mosaic.version = 11 : i64} {
  func.func @_transformer_kernel(%arg0: i32, %arg1: i32, %arg2: memref<1x5x32xf32, #tpu.memory_space<vmem>>, %arg3: memref<1x1x32xf32, #tpu.memory_space<vmem>>, %arg4: memref<1x1x32xf32, #tpu.memory_space<vmem>>, %arg5: memref<1x4x32x8xbf16, #tpu.memory_space<vmem>>, %arg6: memref<1x4x32x8xbf16, #tpu.memory_space<vmem>>, %arg7: memref<1x4x32x8xbf16, #tpu.memory_space<vmem>>, %arg8: memref<1x4x8x32xbf16, #tpu.memory_space<vmem>>, %arg9: memref<1x1x32xf32, #tpu.memory_space<vmem>>, %arg10: memref<1x1x32xf32, #tpu.memory_space<vmem>>, %arg11: memref<1x1x32xf32, #tpu.memory_space<vmem>>, %arg12: memref<1x32x64xbf16, #tpu.memory_space<vmem>>, %arg13: memref<1x1x64xf32, #tpu.memory_space<vmem>>, %arg14: memref<1x64x32xbf16, #tpu.memory_space<vmem>>, %arg15: memref<1x1x32xf32, #tpu.memory_space<vmem>>, %arg16: memref<1x32xf32, #tpu.memory_space<vmem>>, %arg17: memref<1x32xf32, #tpu.memory_space<vmem>>, %arg18: memref<32x128xbf16, #tpu.memory_space<vmem>>, %arg19: memref<1x128xf32, #tpu.memory_space<vmem>>, %arg20: memref<1x1x128xf32, #tpu.memory_space<vmem>>, %arg21: memref<5x32xf32, #tpu.memory_space<vmem>>) attributes {dimension_semantics = [#tpu.dimension_semantics<parallel>, #tpu.dimension_semantics<arbitrary>], iteration_bounds = array<i64: 2, 2>, scalar_prefetch = 0 : i64, scratch_operands = 1 : i64, tpu.core_type = #tpu.core_type<tc>, window_params = [{transform_indices = @transform_0, window_bounds = array<i64: 1, 5, 32>}, {transform_indices = @transform_1, window_bounds = array<i64: 1, 1, 32>}, {transform_indices = @transform_2, window_bounds = array<i64: 1, 1, 32>}, {transform_indices = @transform_3, window_bounds = array<i64: 1, 4, 32, 8>}, {transform_indices = @transform_4, window_bounds = array<i64: 1, 4, 32, 8>}, {transform_indices = @transform_5, window_bounds = array<i64: 1, 4, 32, 8>}, {transform_indices = @transform_6, window_bounds = array<i64: 1, 4, 8, 32>}, {transform_indices = @transform_7, window_bounds = array<i64: 1, 1, 32>}, {transform_indices = @transform_8, window_bounds = array<i64: 1, 1, 32>}, {transform_indices = @transform_9, window_bounds = array<i64: 1, 1, 32>}, {transform_indices = @transform_10, window_bounds = array<i64: 1, 32, 64>}, {transform_indices = @transform_11, window_bounds = array<i64: 1, 1, 64>}, {transform_indices = @transform_12, window_bounds = array<i64: 1, 64, 32>}, {transform_indices = @transform_13, window_bounds = array<i64: 1, 1, 32>}, {pipeline_mode = #tpu.pipeline_mode<synchronous>, transform_indices = @transform_14, window_bounds = array<i64: 1, 32>}, {pipeline_mode = #tpu.pipeline_mode<synchronous>, transform_indices = @transform_15, window_bounds = array<i64: 1, 32>}, {pipeline_mode = #tpu.pipeline_mode<synchronous>, transform_indices = @transform_16, window_bounds = array<i64: 32, 128>}, {pipeline_mode = #tpu.pipeline_mode<synchronous>, transform_indices = @transform_17, window_bounds = array<i64: 1, 128>}, {transform_indices = @transform_18, window_bounds = array<i64: 1, 1, 128>}]} {
    %c0_i32 = arith.constant 0 : i32
    %0 = arith.cmpi eq, %arg1, %c0_i32 : i32
    %1 = arith.extui %0 : i1 to i32
    %c0_i32_0 = arith.constant 0 : i32
    %2 = arith.cmpi ne, %1, %c0_i32_0 : i32
    scf.if %2 {
      %c0_84 = arith.constant 0 : index
      %c0_85 = arith.constant 0 : index
      %c0_86 = arith.constant 0 : index
      %156 = vector.load %arg2[%c0_84, %c0_85, %c0_86] : memref<1x5x32xf32, #tpu.memory_space<vmem>>, vector<1x5x32xf32>
      %157 = vector.shape_cast %156 : vector<1x5x32xf32> to vector<5x32xf32>
      %c0_87 = arith.constant 0 : index
      %c0_88 = arith.constant 0 : index
      %158 = vector.load %arg21[%c0_87, %c0_88] : memref<5x32xf32, #tpu.memory_space<vmem>>, vector<5x32xf32>
      tpu.vector_store %arg21[%c0_87, %c0_88], %157 {strides = array<i32>} : memref<5x32xf32, #tpu.memory_space<vmem>>, vector<5x32xf32>,
    } else {
    }
    %c0 = arith.constant 0 : index
    %c0_1 = arith.constant 0 : index
    %3 = vector.load %arg21[%c0, %c0_1] : memref<5x32xf32, #tpu.memory_space<vmem>>, vector<5x32xf32>
    %c0_2 = arith.constant 0 : index
    %c0_3 = arith.constant 0 : index
    %c0_4 = arith.constant 0 : index
    %4 = vector.load %arg3[%c0_2, %c0_3, %c0_4] : memref<1x1x32xf32, #tpu.memory_space<vmem>>, vector<1x1x32xf32>
    %5 = vector.shape_cast %4 : vector<1x1x32xf32> to vector<1x32xf32>
    %c0_5 = arith.constant 0 : index
    %c0_6 = arith.constant 0 : index
    %c0_7 = arith.constant 0 : index
    %6 = vector.load %arg4[%c0_5, %c0_6, %c0_7] : memref<1x1x32xf32, #tpu.memory_space<vmem>>, vector<1x1x32xf32>
    %7 = vector.shape_cast %6 : vector<1x1x32xf32> to vector<1x32xf32>
    %cst = arith.constant dense<0.000000e+00> : vector<5xf32>
    %8 = vector.multi_reduction <add>, %3, %cst [1] : vector<5x32xf32> to vector<5xf32>
    %9 = vector.shape_cast %8 : vector<5xf32> to vector<5x1xf32>
    %cst_8 = arith.constant 3.200000e+01 : f32
    %10 = vector.broadcast %cst_8 : f32 to vector<5x1xf32>
    %11 = arith.divf %9, %10 : vector<5x1xf32>
    %12 = vector.broadcast %11 : vector<5x1xf32> to vector<5x32xf32>
    %13 = arith.subf %3, %12 : vector<5x32xf32>
    %14 = arith.mulf %13, %13 : vector<5x32xf32>
    %cst_9 = arith.constant dense<0.000000e+00> : vector<5xf32>
    %15 = vector.multi_reduction <add>, %14, %cst_9 [1] : vector<5x32xf32> to vector<5xf32>
    %16 = vector.shape_cast %15 : vector<5xf32> to vector<5x1xf32>
    %cst_10 = arith.constant 3.200000e+01 : f32
    %17 = vector.broadcast %cst_10 : f32 to vector<5x1xf32>
    %18 = arith.divf %16, %17 : vector<5x1xf32>
    %19 = vector.broadcast %11 : vector<5x1xf32> to vector<5x32xf32>
    %20 = arith.subf %3, %19 : vector<5x32xf32>
    %cst_11 = arith.constant 9.99999974E-6 : f32
    %21 = vector.broadcast %cst_11 : f32 to vector<5x1xf32>
    %22 = arith.addf %18, %21 : vector<5x1xf32>
    %23 = math.rsqrt %22 : vector<5x1xf32>
    %24 = vector.broadcast %23 : vector<5x1xf32> to vector<5x32xf32>
    %25 = arith.mulf %20, %24 : vector<5x32xf32>
    %26 = vector.broadcast %5 : vector<1x32xf32> to vector<5x32xf32>
    %27 = arith.mulf %25, %26 : vector<5x32xf32>
    %28 = vector.broadcast %7 : vector<1x32xf32> to vector<5x32xf32>
    %29 = arith.addf %27, %28 : vector<5x32xf32>
    %30 = arith.truncf %29 : vector<5x32xf32> to vector<5x32xbf16>
    %31 = vector.shape_cast %30 : vector<5x32xbf16> to vector<1x5x32xbf16>
    %32 = vector.broadcast %31 : vector<1x5x32xbf16> to vector<4x5x32xbf16>
    %c0_12 = arith.constant 0 : index
    %c0_13 = arith.constant 0 : index
    %c0_14 = arith.constant 0 : index
    %c0_15 = arith.constant 0 : index
    %33 = vector.load %arg5[%c0_12, %c0_13, %c0_14, %c0_15] : memref<1x4x32x8xbf16, #tpu.memory_space<vmem>>, vector<1x4x32x8xbf16>
    %34 = vector.shape_cast %33 : vector<1x4x32x8xbf16> to vector<4x32x8xbf16>
    "tpu.trace_start"() <{level = 10 : i32, message = "hnd,hdk->hnk"}> : () -> ()
    %cst_16 = arith.constant dense<0.000000e+00> : vector<4x5x8xf32>
    %35 = tpu.matmul %32, %34, %cst_16 {dimension_numbers = #tpu.dot_dimension_numbers<[2], [1], [1], [2], [0, 0, 0, 1, 1, 2], [0], [0]>} : vector<4x5x32xbf16>, vector<4x32x8xbf16>, vector<4x5x8xf32> -> vector<4x5x8xf32>
    "tpu.trace_stop"() : () -> ()
    %c0_17 = arith.constant 0 : index
    %c0_18 = arith.constant 0 : index
    %c0_19 = arith.constant 0 : index
    %c0_20 = arith.constant 0 : index
    %36 = vector.load %arg6[%c0_17, %c0_18, %c0_19, %c0_20] : memref<1x4x32x8xbf16, #tpu.memory_space<vmem>>, vector<1x4x32x8xbf16>
    %37 = vector.shape_cast %36 : vector<1x4x32x8xbf16> to vector<4x32x8xbf16>
    "tpu.trace_start"() <{level = 10 : i32, message = "hnd,hdk->hnk"}> : () -> ()
    %cst_21 = arith.constant dense<0.000000e+00> : vector<4x5x8xf32>
    %38 = tpu.matmul %32, %37, %cst_21 {dimension_numbers = #tpu.dot_dimension_numbers<[2], [1], [1], [2], [0, 0, 0, 1, 1, 2], [0], [0]>} : vector<4x5x32xbf16>, vector<4x32x8xbf16>, vector<4x5x8xf32> -> vector<4x5x8xf32>
    "tpu.trace_stop"() : () -> ()
    %c0_22 = arith.constant 0 : index
    %c0_23 = arith.constant 0 : index
    %c0_24 = arith.constant 0 : index
    %c0_25 = arith.constant 0 : index
    %39 = vector.load %arg7[%c0_22, %c0_23, %c0_24, %c0_25] : memref<1x4x32x8xbf16, #tpu.memory_space<vmem>>, vector<1x4x32x8xbf16>
    %40 = vector.shape_cast %39 : vector<1x4x32x8xbf16> to vector<4x32x8xbf16>
    "tpu.trace_start"() <{level = 10 : i32, message = "hnd,hdk->hnk"}> : () -> ()
    %cst_26 = arith.constant dense<0.000000e+00> : vector<4x5x8xf32>
    %41 = tpu.matmul %32, %40, %cst_26 {dimension_numbers = #tpu.dot_dimension_numbers<[2], [1], [1], [2], [0, 0, 0, 1, 1, 2], [0], [0]>} : vector<4x5x32xbf16>, vector<4x32x8xbf16>, vector<4x5x8xf32> -> vector<4x5x8xf32>
    "tpu.trace_stop"() : () -> ()
    %cst_27 = arith.constant 0.353553385 : f32
    %42 = vector.broadcast %cst_27 : f32 to vector<4x5x8xf32>
    %43 = arith.mulf %35, %42 : vector<4x5x8xf32>
    %44 = arith.truncf %43 : vector<4x5x8xf32> to vector<4x5x8xbf16>
    %45 = arith.truncf %38 : vector<4x5x8xf32> to vector<4x5x8xbf16>
    "tpu.trace_start"() <{level = 10 : i32, message = "hqd,hkd->hqk"}> : () -> ()
    %cst_28 = arith.constant dense<0.000000e+00> : vector<4x5x5xf32>
    %46 = tpu.matmul %44, %45, %cst_28 {dimension_numbers = #tpu.dot_dimension_numbers<[2], [2], [1], [1], [0, 0, 0, 1, 1, 1], [0], [0]>} : vector<4x5x8xbf16>, vector<4x5x8xbf16>, vector<4x5x5xf32> -> vector<4x5x5xf32>
    "tpu.trace_stop"() : () -> ()
    %cst_29 = arith.constant dense<0xFF800000> : vector<4x5xf32>
    %47 = vector.multi_reduction <maximumf>, %46, %cst_29 [2] : vector<4x5x5xf32> to vector<4x5xf32>
    %48 = vector.shape_cast %47 : vector<4x5xf32> to vector<4x5x1xf32>
    %49 = vector.broadcast %48 : vector<4x5x1xf32> to vector<4x5x5xf32>
    %50 = arith.subf %46, %49 : vector<4x5x5xf32>
    %51 = math.exp %50 : vector<4x5x5xf32>
    %cst_30 = arith.constant dense<0.000000e+00> : vector<4x5xf32>
    %52 = vector.multi_reduction <add>, %51, %cst_30 [2] : vector<4x5x5xf32> to vector<4x5xf32>
    %53 = vector.shape_cast %52 : vector<4x5xf32> to vector<4x5x1xf32>
    %54 = vector.broadcast %53 : vector<4x5x1xf32> to vector<4x5x5xf32>
    %55 = arith.divf %51, %54 : vector<4x5x5xf32>
    %56 = arith.truncf %55 : vector<4x5x5xf32> to vector<4x5x5xbf16>
    %57 = arith.truncf %41 : vector<4x5x8xf32> to vector<4x5x8xbf16>
    "tpu.trace_start"() <{level = 10 : i32, message = "hqk,hkd->hqd"}> : () -> ()
    %cst_31 = arith.constant dense<0.000000e+00> : vector<4x5x8xf32>
    %58 = tpu.matmul %56, %57, %cst_31 {dimension_numbers = #tpu.dot_dimension_numbers<[2], [1], [1], [2], [0, 0, 0, 1, 1, 2], [0], [0]>} : vector<4x5x5xbf16>, vector<4x5x8xbf16>, vector<4x5x8xf32> -> vector<4x5x8xf32>
    "tpu.trace_stop"() : () -> ()
    %59 = arith.truncf %58 : vector<4x5x8xf32> to vector<4x5x8xbf16>
    %c0_32 = arith.constant 0 : index
    %c0_33 = arith.constant 0 : index
    %c0_34 = arith.constant 0 : index
    %c0_35 = arith.constant 0 : index
    %60 = vector.load %arg8[%c0_32, %c0_33, %c0_34, %c0_35] : memref<1x4x8x32xbf16, #tpu.memory_space<vmem>>, vector<1x4x8x32xbf16>
    %61 = vector.shape_cast %60 : vector<1x4x8x32xbf16> to vector<4x8x32xbf16>
    "tpu.trace_start"() <{level = 10 : i32, message = "hnd,hde->hne"}> : () -> ()
    %cst_36 = arith.constant dense<0.000000e+00> : vector<4x5x32xf32>
    %62 = tpu.matmul %59, %61, %cst_36 {dimension_numbers = #tpu.dot_dimension_numbers<[2], [1], [1], [2], [0, 0, 0, 1, 1, 2], [0], [0]>} : vector<4x5x8xbf16>, vector<4x8x32xbf16>, vector<4x5x32xf32> -> vector<4x5x32xf32>
    "tpu.trace_stop"() : () -> ()
    %cst_37 = arith.constant dense<0.000000e+00> : vector<5x32xf32>
    %63 = vector.multi_reduction <add>, %62, %cst_37 [0] : vector<4x5x32xf32> to vector<5x32xf32>
    %c0_38 = arith.constant 0 : index
    %c0_39 = arith.constant 0 : index
    %c0_40 = arith.constant 0 : index
    %64 = vector.load %arg9[%c0_38, %c0_39, %c0_40] : memref<1x1x32xf32, #tpu.memory_space<vmem>>, vector<1x1x32xf32>
    %65 = vector.shape_cast %64 : vector<1x1x32xf32> to vector<1x32xf32>
    %66 = vector.broadcast %65 : vector<1x32xf32> to vector<5x32xf32>
    %67 = arith.addf %63, %66 : vector<5x32xf32>
    %68 = arith.addf %67, %3 : vector<5x32xf32>
    %c0_41 = arith.constant 0 : index
    %c0_42 = arith.constant 0 : index
    %c0_43 = arith.constant 0 : index
    %69 = vector.load %arg10[%c0_41, %c0_42, %c0_43] : memref<1x1x32xf32, #tpu.memory_space<vmem>>, vector<1x1x32xf32>
    %70 = vector.shape_cast %69 : vector<1x1x32xf32> to vector<1x32xf32>
    %c0_44 = arith.constant 0 : index
    %c0_45 = arith.constant 0 : index
    %c0_46 = arith.constant 0 : index
    %71 = vector.load %arg11[%c0_44, %c0_45, %c0_46] : memref<1x1x32xf32, #tpu.memory_space<vmem>>, vector<1x1x32xf32>
    %72 = vector.shape_cast %71 : vector<1x1x32xf32> to vector<1x32xf32>
    %cst_47 = arith.constant dense<0.000000e+00> : vector<5xf32>
    %73 = vector.multi_reduction <add>, %68, %cst_47 [1] : vector<5x32xf32> to vector<5xf32>
    %74 = vector.shape_cast %73 : vector<5xf32> to vector<5x1xf32>
    %cst_48 = arith.constant 3.200000e+01 : f32
    %75 = vector.broadcast %cst_48 : f32 to vector<5x1xf32>
    %76 = arith.divf %74, %75 : vector<5x1xf32>
    %77 = vector.broadcast %76 : vector<5x1xf32> to vector<5x32xf32>
    %78 = arith.subf %68, %77 : vector<5x32xf32>
    %79 = arith.mulf %78, %78 : vector<5x32xf32>
    %cst_49 = arith.constant dense<0.000000e+00> : vector<5xf32>
    %80 = vector.multi_reduction <add>, %79, %cst_49 [1] : vector<5x32xf32> to vector<5xf32>
    %81 = vector.shape_cast %80 : vector<5xf32> to vector<5x1xf32>
    %cst_50 = arith.constant 3.200000e+01 : f32
    %82 = vector.broadcast %cst_50 : f32 to vector<5x1xf32>
    %83 = arith.divf %81, %82 : vector<5x1xf32>
    %84 = vector.broadcast %76 : vector<5x1xf32> to vector<5x32xf32>
    %85 = arith.subf %68, %84 : vector<5x32xf32>
    %cst_51 = arith.constant 9.99999974E-6 : f32
    %86 = vector.broadcast %cst_51 : f32 to vector<5x1xf32>
    %87 = arith.addf %83, %86 : vector<5x1xf32>
    %88 = math.rsqrt %87 : vector<5x1xf32>
    %89 = vector.broadcast %88 : vector<5x1xf32> to vector<5x32xf32>
    %90 = arith.mulf %85, %89 : vector<5x32xf32>
    %91 = vector.broadcast %70 : vector<1x32xf32> to vector<5x32xf32>
    %92 = arith.mulf %90, %91 : vector<5x32xf32>
    %93 = vector.broadcast %72 : vector<1x32xf32> to vector<5x32xf32>
    %94 = arith.addf %92, %93 : vector<5x32xf32>
    %95 = arith.truncf %94 : vector<5x32xf32> to vector<5x32xbf16>
    %c0_52 = arith.constant 0 : index
    %c0_53 = arith.constant 0 : index
    %c0_54 = arith.constant 0 : index
    %96 = vector.load %arg12[%c0_52, %c0_53, %c0_54] : memref<1x32x64xbf16, #tpu.memory_space<vmem>>, vector<1x32x64xbf16>
    %97 = vector.shape_cast %96 : vector<1x32x64xbf16> to vector<32x64xbf16>
    %cst_55 = arith.constant dense<0.000000e+00> : vector<5x64xf32>
    %98 = tpu.matmul %95, %97, %cst_55 {dimension_numbers = #tpu.dot_dimension_numbers<[1], [0], [0], [1], [0, 0, 1, 1], [], []>} : vector<5x32xbf16>, vector<32x64xbf16>, vector<5x64xf32> -> vector<5x64xf32>
    %c0_56 = arith.constant 0 : index
    %c0_57 = arith.constant 0 : index
    %c0_58 = arith.constant 0 : index
    %99 = vector.load %arg13[%c0_56, %c0_57, %c0_58] : memref<1x1x64xf32, #tpu.memory_space<vmem>>, vector<1x1x64xf32>
    %100 = vector.shape_cast %99 : vector<1x1x64xf32> to vector<1x64xf32>
    %101 = vector.broadcast %100 : vector<1x64xf32> to vector<5x64xf32>
    %102 = arith.addf %98, %101 : vector<5x64xf32>
    %cst_59 = arith.constant 5.000000e-01 : f32
    %103 = vector.broadcast %cst_59 : f32 to vector<5x64xf32>
    %104 = arith.mulf %103, %102 : vector<5x64xf32>
    %cst_60 = arith.constant 0.707106769 : f32
    %105 = vector.broadcast %cst_60 : f32 to vector<5x64xf32>
    %106 = arith.mulf %102, %105 : vector<5x64xf32>
    %107 = math.absf %106 : vector<5x64xf32>
    %cst_61 = arith.constant 0.327591091 : f32
    %108 = vector.broadcast %cst_61 : f32 to vector<5x64xf32>
    %109 = arith.mulf %108, %107 : vector<5x64xf32>
    %cst_62 = arith.constant 1.000000e+00 : f32
    %110 = vector.broadcast %cst_62 : f32 to vector<5x64xf32>
    %111 = arith.addf %110, %109 : vector<5x64xf32>
    %cst_63 = arith.constant 1.000000e+00 : f32
    %112 = vector.broadcast %cst_63 : f32 to vector<5x64xf32>
    %113 = arith.divf %112, %111 : vector<5x64xf32>
    %cst_64 = arith.constant 1.06140542 : f32
    %114 = vector.broadcast %cst_64 : f32 to vector<5x64xf32>
    %115 = arith.mulf %114, %113 : vector<5x64xf32>
    %cst_65 = arith.constant -1.45315206 : f32
    %116 = vector.broadcast %cst_65 : f32 to vector<5x64xf32>
    %117 = arith.addf %115, %116 : vector<5x64xf32>
    %118 = arith.mulf %117, %113 : vector<5x64xf32>
    %cst_66 = arith.constant 1.42141378 : f32
    %119 = vector.broadcast %cst_66 : f32 to vector<5x64xf32>
    %120 = arith.addf %118, %119 : vector<5x64xf32>
    %121 = arith.mulf %120, %113 : vector<5x64xf32>
    %cst_67 = arith.constant -0.284496725 : f32
    %122 = vector.broadcast %cst_67 : f32 to vector<5x64xf32>
    %123 = arith.addf %121, %122 : vector<5x64xf32>
    %124 = arith.mulf %123, %113 : vector<5x64xf32>
    %cst_68 = arith.constant 0.254829586 : f32
    %125 = vector.broadcast %cst_68 : f32 to vector<5x64xf32>
    %126 = arith.addf %124, %125 : vector<5x64xf32>
    %127 = arith.mulf %126, %113 : vector<5x64xf32>
    %cst_69 = arith.constant 0.000000e+00 : f32
    %128 = vector.broadcast %cst_69 : f32 to vector<5x64xf32>
    %129 = arith.subf %128, %107 : vector<5x64xf32>
    %130 = arith.mulf %129, %107 : vector<5x64xf32>
    %131 = math.exp %130 : vector<5x64xf32>
    %132 = arith.mulf %127, %131 : vector<5x64xf32>
    %cst_70 = arith.constant 1.000000e+00 : f32
    %133 = vector.broadcast %cst_70 : f32 to vector<5x64xf32>
    %134 = arith.subf %133, %132 : vector<5x64xf32>
    %cst_71 = arith.constant 0.000000e+00 : f32
    %135 = vector.broadcast %cst_71 : f32 to vector<5x64xf32>
    %136 = arith.cmpf oge, %106, %135 : vector<5x64xf32>
    %cst_72 = arith.constant 0.000000e+00 : f32
    %137 = vector.broadcast %cst_72 : f32 to vector<5x64xf32>
    %138 = arith.subf %137, %134 : vector<5x64xf32>
    %139 = arith.select %136, %134, %138 : vector<5x64xi1>, vector<5x64xf32>
    %cst_73 = arith.constant 1.000000e+00 : f32
    %140 = vector.broadcast %cst_73 : f32 to vector<5x64xf32>
    %141 = arith.addf %140, %139 : vector<5x64xf32>
    %142 = arith.mulf %104, %141 : vector<5x64xf32>
    %143 = arith.truncf %142 : vector<5x64xf32> to vector<5x64xbf16>
    %c0_74 = arith.constant 0 : index
    %c0_75 = arith.constant 0 : index
    %c0_76 = arith.constant 0 : index
    %144 = vector.load %arg14[%c0_74, %c0_75, %c0_76] : memref<1x64x32xbf16, #tpu.memory_space<vmem>>, vector<1x64x32xbf16>
    %145 = vector.shape_cast %144 : vector<1x64x32xbf16> to vector<64x32xbf16>
    %cst_77 = arith.constant dense<0.000000e+00> : vector<5x32xf32>
    %146 = tpu.matmul %143, %145, %cst_77 {dimension_numbers = #tpu.dot_dimension_numbers<[1], [0], [0], [1], [0, 0, 1, 1], [], []>} : vector<5x64xbf16>, vector<64x32xbf16>, vector<5x32xf32> -> vector<5x32xf32>
    %c0_78 = arith.constant 0 : index
    %c0_79 = arith.constant 0 : index
    %c0_80 = arith.constant 0 : index
    %147 = vector.load %arg15[%c0_78, %c0_79, %c0_80] : memref<1x1x32xf32, #tpu.memory_space<vmem>>, vector<1x1x32xf32>
    %148 = vector.shape_cast %147 : vector<1x1x32xf32> to vector<1x32xf32>
    %149 = vector.broadcast %148 : vector<1x32xf32> to vector<5x32xf32>
    %150 = arith.addf %146, %149 : vector<5x32xf32>
    %151 = arith.addf %150, %68 : vector<5x32xf32>
    %c0_81 = arith.constant 0 : index
    %c0_82 = arith.constant 0 : index
    %152 = vector.load %arg21[%c0_81, %c0_82] : memref<5x32xf32, #tpu.memory_space<vmem>>, vector<5x32xf32>
    tpu.vector_store %arg21[%c0_81, %c0_82], %151 {strides = array<i32>} : memref<5x32xf32, #tpu.memory_space<vmem>>, vector<5x32xf32>,
    %c1_i32 = arith.constant 1 : i32
    %153 = arith.cmpi eq, %arg1, %c1_i32 : i32
    %154 = arith.extui %153 : i1 to i32
    %c0_i32_83 = arith.constant 0 : i32
    %155 = arith.cmpi ne, %154, %c0_i32_83 : i32
    scf.if %155 {
      %156 = vector.extract_strided_slice %151 {offsets = [0, 0], sizes = [1, 32], strides = [1, 1]} : vector<5x32xf32> to vector<1x32xf32>
      %c0_84 = arith.constant 0 : index
      %c0_85 = arith.constant 0 : index
      %157 = vector.load %arg16[%c0_84, %c0_85] : memref<1x32xf32, #tpu.memory_space<vmem>>, vector<1x32xf32>
      %c0_86 = arith.constant 0 : index
      %c0_87 = arith.constant 0 : index
      %158 = vector.load %arg17[%c0_86, %c0_87] : memref<1x32xf32, #tpu.memory_space<vmem>>, vector<1x32xf32>
      %cst_88 = arith.constant dense<0.000000e+00> : vector<1xf32>
      %159 = vector.multi_reduction <add>, %156, %cst_88 [1] : vector<1x32xf32> to vector<1xf32>
      %160 = vector.shape_cast %159 : vector<1xf32> to vector<1x1xf32>
      %cst_89 = arith.constant 3.200000e+01 : f32
      %161 = vector.broadcast %cst_89 : f32 to vector<1x1xf32>
      %162 = arith.divf %160, %161 : vector<1x1xf32>
      %163 = vector.broadcast %162 : vector<1x1xf32> to vector<1x32xf32>
      %164 = arith.subf %156, %163 : vector<1x32xf32>
      %165 = arith.mulf %164, %164 : vector<1x32xf32>
      %cst_90 = arith.constant dense<0.000000e+00> : vector<1xf32>
      %166 = vector.multi_reduction <add>, %165, %cst_90 [1] : vector<1x32xf32> to vector<1xf32>
      %167 = vector.shape_cast %166 : vector<1xf32> to vector<1x1xf32>
      %cst_91 = arith.constant 3.200000e+01 : f32
      %168 = vector.broadcast %cst_91 : f32 to vector<1x1xf32>
      %169 = arith.divf %167, %168 : vector<1x1xf32>
      %170 = vector.broadcast %162 : vector<1x1xf32> to vector<1x32xf32>
      %171 = arith.subf %156, %170 : vector<1x32xf32>
      %cst_92 = arith.constant 9.99999974E-6 : f32
      %172 = vector.broadcast %cst_92 : f32 to vector<1x1xf32>
      %173 = arith.addf %169, %172 : vector<1x1xf32>
      %174 = math.rsqrt %173 : vector<1x1xf32>
      %175 = vector.broadcast %174 : vector<1x1xf32> to vector<1x32xf32>
      %176 = arith.mulf %171, %175 : vector<1x32xf32>
      %177 = arith.mulf %176, %157 : vector<1x32xf32>
      %178 = arith.addf %177, %158 : vector<1x32xf32>
      %179 = arith.truncf %178 : vector<1x32xf32> to vector<1x32xbf16>
      %c0_93 = arith.constant 0 : index
      %c0_94 = arith.constant 0 : index
      %180 = vector.load %arg18[%c0_93, %c0_94] : memref<32x128xbf16, #tpu.memory_space<vmem>>, vector<32x128xbf16>
      %cst_95 = arith.constant dense<0.000000e+00> : vector<1x128xf32>
      %181 = tpu.matmul %179, %180, %cst_95 {dimension_numbers = #tpu.dot_dimension_numbers<[1], [0], [0], [1], [0, 0, 1, 1], [], []>} : vector<1x32xbf16>, vector<32x128xbf16>, vector<1x128xf32> -> vector<1x128xf32>
      %c0_96 = arith.constant 0 : index
      %c0_97 = arith.constant 0 : index
      %182 = vector.load %arg19[%c0_96, %c0_97] : memref<1x128xf32, #tpu.memory_space<vmem>>, vector<1x128xf32>
      %183 = arith.addf %181, %182 : vector<1x128xf32>
      %c0_98 = arith.constant 0 : index
      %c0_99 = arith.constant 0 : index
      %c0_100 = arith.constant 0 : index
      %184 = vector.load %arg20[%c0_98, %c0_99, %c0_100] : memref<1x1x128xf32, #tpu.memory_space<vmem>>, vector<1x1x128xf32>
      %185 = vector.shape_cast %184 : vector<1x1x128xf32> to vector<1x128xf32>
      %186 = vector.shape_cast %183 : vector<1x128xf32> to vector<1x1x128xf32>
      tpu.vector_store %arg20[%c0_98, %c0_99, %c0_100], %186 {strides = array<i32>} : memref<1x1x128xf32, #tpu.memory_space<vmem>>, vector<1x1x128xf32>,
    } else {
    }
    return
  }
  func.func @transform_0(%arg0: i32, %arg1: i32) -> (i32, i32, i32) {
    %c0_i32 = arith.constant 0 : i32
    %c0_i32_0 = arith.constant 0 : i32
    %c0_i32_1 = arith.constant 0 : i32
    return %arg0, %c0_i32, %c0_i32_0 : i32, i32, i32
  }
  func.func @transform_1(%arg0: i32, %arg1: i32) -> (i32, i32, i32) {
    %c0_i32 = arith.constant 0 : i32
    %c0_i32_0 = arith.constant 0 : i32
    %c0_i32_1 = arith.constant 0 : i32
    return %arg1, %c0_i32, %c0_i32_0 : i32, i32, i32
  }
  func.func @transform_2(%arg0: i32, %arg1: i32) -> (i32, i32, i32) {
    %c0_i32 = arith.constant 0 : i32
    %c0_i32_0 = arith.constant 0 : i32
    %c0_i32_1 = arith.constant 0 : i32
    return %arg1, %c0_i32, %c0_i32_0 : i32, i32, i32
  }
  func.func @transform_3(%arg0: i32, %arg1: i32) -> (i32, i32, i32, i32) {
    %c0_i32 = arith.constant 0 : i32
    %c0_i32_0 = arith.constant 0 : i32
    %c0_i32_1 = arith.constant 0 : i32
    %c0_i32_2 = arith.constant 0 : i32
    return %arg1, %c0_i32, %c0_i32_0, %c0_i32_1 : i32, i32, i32, i32
  }
  func.func @transform_4(%arg0: i32, %arg1: i32) -> (i32, i32, i32, i32) {
    %c0_i32 = arith.constant 0 : i32
    %c0_i32_0 = arith.constant 0 : i32
    %c0_i32_1 = arith.constant 0 : i32
    %c0_i32_2 = arith.constant 0 : i32
    return %arg1, %c0_i32, %c0_i32_0, %c0_i32_1 : i32, i32, i32, i32
  }
  func.func @transform_5(%arg0: i32, %arg1: i32) -> (i32, i32, i32, i32) {
    %c0_i32 = arith.constant 0 : i32
    %c0_i32_0 = arith.constant 0 : i32
    %c0_i32_1 = arith.constant 0 : i32
    %c0_i32_2 = arith.constant 0 : i32
    return %arg1, %c0_i32, %c0_i32_0, %c0_i32_1 : i32, i32, i32, i32
  }
  func.func @transform_6(%arg0: i32, %arg1: i32) -> (i32, i32, i32, i32) {
    %c0_i32 = arith.constant 0 : i32
    %c0_i32_0 = arith.constant 0 : i32
    %c0_i32_1 = arith.constant 0 : i32
    %c0_i32_2 = arith.constant 0 : i32
    return %arg1, %c0_i32, %c0_i32_0, %c0_i32_1 : i32, i32, i32, i32
  }
  func.func @transform_7(%arg0: i32, %arg1: i32) -> (i32, i32, i32) {
    %c0_i32 = arith.constant 0 : i32
    %c0_i32_0 = arith.constant 0 : i32
    %c0_i32_1 = arith.constant 0 : i32
    return %arg1, %c0_i32, %c0_i32_0 : i32, i32, i32
  }
  func.func @transform_8(%arg0: i32, %arg1: i32) -> (i32, i32, i32) {
    %c0_i32 = arith.constant 0 : i32
    %c0_i32_0 = arith.constant 0 : i32
    %c0_i32_1 = arith.constant 0 : i32
    return %arg1, %c0_i32, %c0_i32_0 : i32, i32, i32
  }
  func.func @transform_9(%arg0: i32, %arg1: i32) -> (i32, i32, i32) {
    %c0_i32 = arith.constant 0 : i32
    %c0_i32_0 = arith.constant 0 : i32
    %c0_i32_1 = arith.constant 0 : i32
    return %arg1, %c0_i32, %c0_i32_0 : i32, i32, i32
  }
  func.func @transform_10(%arg0: i32, %arg1: i32) -> (i32, i32, i32) {
    %c0_i32 = arith.constant 0 : i32
    %c0_i32_0 = arith.constant 0 : i32
    %c0_i32_1 = arith.constant 0 : i32
    return %arg1, %c0_i32, %c0_i32_0 : i32, i32, i32
  }
  func.func @transform_11(%arg0: i32, %arg1: i32) -> (i32, i32, i32) {
    %c0_i32 = arith.constant 0 : i32
    %c0_i32_0 = arith.constant 0 : i32
    %c0_i32_1 = arith.constant 0 : i32
    return %arg1, %c0_i32, %c0_i32_0 : i32, i32, i32
  }
  func.func @transform_12(%arg0: i32, %arg1: i32) -> (i32, i32, i32) {
    %c0_i32 = arith.constant 0 : i32
    %c0_i32_0 = arith.constant 0 : i32
    %c0_i32_1 = arith.constant 0 : i32
    return %arg1, %c0_i32, %c0_i32_0 : i32, i32, i32
  }
  func.func @transform_13(%arg0: i32, %arg1: i32) -> (i32, i32, i32) {
    %c0_i32 = arith.constant 0 : i32
    %c0_i32_0 = arith.constant 0 : i32
    %c0_i32_1 = arith.constant 0 : i32
    return %arg1, %c0_i32, %c0_i32_0 : i32, i32, i32
  }
  func.func @transform_14(%arg0: i32, %arg1: i32) -> (i32, i32) {
    %c0_i32 = arith.constant 0 : i32
    %c0_i32_0 = arith.constant 0 : i32
    %c0_i32_1 = arith.constant 0 : i32
    return %c0_i32, %c0_i32_0 : i32, i32
  }
  func.func @transform_15(%arg0: i32, %arg1: i32) -> (i32, i32) {
    %c0_i32 = arith.constant 0 : i32
    %c0_i32_0 = arith.constant 0 : i32
    %c0_i32_1 = arith.constant 0 : i32
    return %c0_i32, %c0_i32_0 : i32, i32
  }
  func.func @transform_16(%arg0: i32, %arg1: i32) -> (i32, i32) {
    %c0_i32 = arith.constant 0 : i32
    %c0_i32_0 = arith.constant 0 : i32
    %c0_i32_1 = arith.constant 0 : i32
    return %c0_i32, %c0_i32_0 : i32, i32
  }
  func.func @transform_17(%arg0: i32, %arg1: i32) -> (i32, i32) {
    %c0_i32 = arith.constant 0 : i32
    %c0_i32_0 = arith.constant 0 : i32
    %c0_i32_1 = arith.constant 0 : i32
    return %c0_i32, %c0_i32_0 : i32, i32
  }
  func.func @transform_18(%arg0: i32, %arg1: i32) -> (i32, i32, i32) {
    %c0_i32 = arith.constant 0 : i32
    %c0_i32_0 = arith.constant 0 : i32
    %c0_i32_1 = arith.constant 0 : i32
    return %arg0, %c0_i32, %c0_i32_0 : i32, i32, i32
  }
}

</mosaic_0001>

<bundles_post_ra>
// kernel: vit_forward.2
= control target key start
LH: loop header
LB: loop body
LE: loop exit
PB: predicated region body
PF: predicated region fallthrough
CT: control target
= control target key end

     0   :  { %s778_s27 = smov 0   ;;  %s872_s0 = inlined_call_operand.vmem [shape: f32[2,4,256], index: 0, kind: input, shape index: {}]   ;;  %s873_s1 = inlined_call_operand.vmem [shape: f32[1,256], index: 1, kind: input, shape index: {}]   ;;  %s874_s2 = inlined_call_operand.vmem [shape: f32[1,256], index: 2, kind: input, shape index: {}]   ;;  %s875_s3 = inlined_call_operand.vmem [shape: bf16[256,32], index: 3, kind: input, shape index: {}]   ;;  %s876_s4 = inlined_call_operand.vmem [shape: f32[1,32], index: 4, kind: input, shape index: {}]   ;;  %s877_s5 = inlined_call_operand.vmem [shape: f32[1,32], index: 5, kind: input, shape index: {}]   ;;  %s878_s6 = inlined_call_operand.vmem [shape: f32[1,32], index: 6, kind: input, shape index: {}]   ;;  %s879_s7 = inlined_call_operand.vmem [shape: f32[1,4,32], index: 7, kind: input, shape index: {}]   ;;  %s880_s8 = inlined_call_operand.vmem [shape: f32[2,4,32], index: 8, kind: output, shape index: {}]  }
   0x1 LB: > { %s642_s28 = sadd.s32 4294967295, %s730_s27   ;;  %p646_p0 = scmp.ge.s32.totalorder %s730_s27, 1  ;;  %s730_s27 = sphi %s778_s27, %s18_s27  }
   0x2   : > { %p262_p1 = scmp.lt.s32.totalorder %s730_s27, 3 }
   0x4   : > { %p263_p2 = pnand %p646_p0, %p262_p1 }
   0x5   : > { %p295_p3 = scmp.lt.s32.totalorder (!%p263_p2), %s642_s28, 1  ;;  %vm311_vm0 = vcmask (!%p263_p2), 1043456   ;;  %v704_v5 = vld [vmem:[%s875_s3 + $0x40] sm:$0xff] (!%p263_p2)   ;;  %v732_v7 = vmov (!%p263_p2), 839922192   ;;  %v323_v9 = vlaneseq (!%p263_p2)  ;;  %v706_v22 = vld [vmem:[%s875_s3 + $0x48] sm:$0xff] (!%p263_p2)  }
   0x6   : > { %266 = sbr.rel (%p263_p2) target bundleno = 880 (0x370), region = 52  ;;  %v705_v6 = vld [vmem:[%s875_s3] sm:$0xff] (!%p263_p2)   ;;  %672 = vmatprep.subr.bf16.mxu0 (!%p263_p2), %v704_v5  ;;  %v321_v8 = vunpack.c.l.s4 (!%p263_p2), %v732_v7  ;;  %v707_v23 = vld [vmem:[%s875_s3 + $0x8] sm:$0xff] (!%p263_p2)   ;;  %v708_v24 = vld [vmem:[%s875_s3 + $0x50] sm:$0xff] (!%p263_p2)   ;;  %vm557_vm1 = vcmask (!%p263_p2), 257024  }
   0x7   : > { %673 = vmatpush3.bf16.msra.mxu0 (!%p263_p2), %v705_v6  ;;  %v324_v11 = vshrl.u32 (!%p263_p2), %v323_v9, 7  ;;  %v709_v25 = vld [vmem:[%s875_s3 + $0x10] sm:$0xff] (!%p263_p2)   ;;  %v710_v26 = vld [vmem:[%s875_s3 + $0x58] sm:$0xff] (!%p263_p2)   ;;  %v712_v28 = vld [vmem:[%s875_s3 + $0x60] sm:$0xff] (!%p263_p2)  }
   0x8   : > { %v322_v10 = vunpack.c.0.s8 (!%p263_p2), %v321_v8  ;;  %674 = vmatprep.subr.bf16.mxu0 (!%p263_p2), %v706_v22  ;;  %v711_v27 = vld [vmem:[%s875_s3 + $0x18] sm:$0xff] (!%p263_p2)   ;;  %v713_v29 = vld [vmem:[%s875_s3 + $0x20] sm:$0xff] (!%p263_p2)   ;;  %v714_v30 = vld [vmem:[%s875_s3 + $0x68] sm:$0xff] (!%p263_p2)  }
   0x9   : > { %v715_v31 = vld [vmem:[%s875_s3 + $0x28] sm:$0xff] (!%p263_p2)   ;;  %v716_v32 = vld [vmem:[%s875_s3 + $0x70] sm:$0xff] (!%p263_p2)   ;;  %v718_v34 = vld [vmem:[%s875_s3 + $0x78] sm:$0xff] (!%p263_p2)   ;;  %v354_v39 = vsub.s32 (!%p263_p2), 0, %v324_v11  ;;  %v358_v40 = vsub.s32 (!%p263_p2), 1, %v324_v11 }
   0xa   : > { %v325_v12 = vsub.s32 (!%p263_p2), %v322_v10, %v324_v11  ;;  %v717_v33 = vld [vmem:[%s875_s3 + $0x30] sm:$0xff] (!%p263_p2)   ;;  %v719_v35 = vld [vmem:[%s875_s3 + $0x38] sm:$0xff] (!%p263_p2)   ;;  %v306_v41 = vld [vmem:[%s873_s1] sm:$0x3] (!%p263_p2) }
   0xb   : > { %675 = vmatpush3.bf16.msra.mxu0 (!%p263_p2), %v707_v23  ;;  %v307_v42 = vld [vmem:[%s874_s2] sm:$0x3] (!%p263_p2)  ;;  %v355_v43 = vrot.slane (!%p263_p2), %v306_v41, %v354_v39  ;;  %v359_v44 = vrot.slane (!%p263_p2), %v306_v41, %v358_v40 }
   0xc   : > { %676 = vmatprep.subr.bf16.mxu0 (!%p263_p2), %v708_v24  ;;  %v367_v45 = vrot.slane (!%p263_p2), %v307_v42, %v354_v39  ;;  %v371_v46 = vrot.slane (!%p263_p2), %v307_v42, %v358_v40  ;;  %v650_v59 = vld [vmem:[%s876_s4] ss:$0 sm:$0xff] (!%p263_p2) }
   0xd   : > { %s882_s28 = smov (!%p295_p3, %s642_s28), 1  ;;  %v360_v49 = vcombine.low %v355_v43, %v359_v44  ;;  %v667_v10 = vld [vmem:[%s877_s5] ss:$0 sm:$0xff] }
   0xe   : > { %s671_s29 = sshll.u32 %s882_s28, 3  ;;  %v372_v51 = vcombine.low %v367_v45, %v371_v46  ;;  %s649_s13 = sshll.u32 %s882_s28, 2 }
   0xf   : > { %s299_s10 = scalar_lea.vmem %s872_s0, %s671_s29  ;;  %677 = vmatpush3.bf16.msra.mxu0 %v709_v25  ;;  %s303_s18 = scalar_lea.vmem %s880_s8, %s649_s13 }
  0x10   : > { %v305_v0 = vld [vmem:[%s299_s10] sm:$0xff]  ;;  %678 = vmatprep.subr.bf16.mxu0 %v710_v26 }
  0x11   : > { %v309_v1 = vcombine.high %v305_v0, %v305_v0  ;;  %v312_v2 = vsel %vm311_vm0, %v305_v0, 0.0 }
  0x13   : > { %v313_v3 = vsel %vm311_vm0, %v309_v1, 0.0  ;;  %679 = vmatpush3.bf16.msra.mxu0 %v711_v27 }
  0x14   : > { %v314_v4 = vadd.f32 %v313_v3, %v312_v2  ;;  %680 = vmatprep.subr.bf16.mxu0 %v712_v28 }
  0x16   : > { %315 = vadd.xlane.f32.xlu0 %v314_v4 }
  0x17   : > { %681 = vmatpush3.bf16.msra.mxu0 %v713_v29 }
  0x18   : > { %682 = vmatprep.subr.bf16.mxu0 %v714_v30 }
  0x1b   : > { %683 = vmatpush3.bf16.msra.mxu0 %v715_v31 }
  0x1c   : > { %684 = vmatprep.subr.bf16.mxu0 %v716_v32 }
  0x1f   : > { %685 = vmatpush3.bf16.msra.mxu0 %v717_v33 }
  0x20   : > { %686 = vmatprep.subr.bf16.mxu0 %v718_v34 }
  0x23   : > { %687 = vmatpush3.bf16.msra.mxu0 %v719_v35 }
  0xa3   : > { %v316_v13 = vpop.xlane.xlu0 %315 }
  0xa4   : > { %v318_v14 = vmul.f32 0.00390625, %v316_v13 }
  0xa6   : > { %v326_v15 = vrot.slane %v318_v14, %v325_v12  ;;  %v586_v14 = vld [vmem:[%s879_s7] sm:$0xf] }
  0xa8   : > { %v328_v16 = vsub.f32 %v305_v0, %v326_v15 }
  0xaa   : > { %v329_v17 = vmul.f32 %v328_v16, %v328_v16 }
  0xac   : > { %v331_v18 = vcombine.high %v329_v17, %v329_v17  ;;  %v333_v19 = vsel %vm311_vm0, %v329_v17, 0.0 }
  0xae   : > { %v334_v20 = vsel %vm311_vm0, %v331_v18, 0.0 }
  0xaf   : > { %v335_v21 = vadd.f32 %v334_v20, %v333_v19 }
  0xb1   : > { %336 = vadd.xlane.f32.xlu0 %v335_v21 }
 0x13e   : > { %v337_v36 = vpop.xlane.xlu0 %336 }
 0x13f   : > { %v338_v37 = vmul.f32 0.00390625, %v337_v36 }
 0x141   : > { %v339_v38 = vadd.f32 1e-05, %v338_v37 }
 0x143   : > { %720 = vrsqrt.f32 %v339_v38 }
 0x14d   : > { %v721_v47 = vpop.eup %720 }
 0x14e   : > { %v348_v48 = vrot.slane %v721_v47, %v325_v12  ;;  %v668_v12 = vld [vmem:[%s878_s6] ss:$0 sm:$0xff] }
 0x150   : > { %v350_v50 = vmul.f32 %v348_v48, %v328_v16 }
 0x152   : > { %v362_v52 = vmul.f32 %v360_v49, %v350_v50 }
 0x154   : > { %v374_v53 = vadd.f32 %v372_v51, %v362_v52 }
 0x156   : > { %v376_v54 = vcombine.high %v374_v53, %v374_v53  ;;  %v378_v56 = vpack.c.bf16 %v374_v53, %v374_v53 }
 0x158   : > { %v379_v55 = vpack.c.bf16 %v376_v54, %v376_v54 }
 0x15a   : > { %547 = vmatprep.mubr.bf16.mxu0 %v379_v55 }
 0x15b   : > { %548 = vmatmul.mubr.bf16.vlgmr.msra.gmra.mrb[0].mxu0 %v378_v56 }
 0x22e   : > { %v688_v57 = vpop.f32.mrb[0].mxu0 }
 0x22f   : > { %v689_v58 = vpop.f32.mrb[1].mxu0 }
 0x230   : > { %v690_v60 = vadd.f32 %v689_v58, %v688_v57  ;;  %v691_v61 = vpop.f32.mrb[2].mxu0 }
 0x231   : > { %v692_v62 = vpop.f32.mrb[3].mxu0 }
 0x232   : > { %v550_v63 = vadd.f32 %v690_v60, %v650_v59 }
 0x234   : > { %v558_v0 = vsel %vm557_vm1, %v550_v63, 0.0 }
 0x235   : > { %559 = vadd.xlane.f32.xlu1 %v558_v0 }
 0x2c2   : > { %v560_v1 = vpop.xlane.xlu1 %559 }
 0x2c3   : > { %v562_v2 = vmul.f32 0.03125, %v560_v1 }
 0x2c5   : > { %v563_v3 = vsub.f32 %v550_v63, %v562_v2 }
 0x2c7   : > { %v564_v4 = vmul.f32 %v563_v3, %v563_v3 }
 0x2c9   : > { %v565_v5 = vsel %vm557_vm1, %v564_v4, 0.0 }
 0x2ca   : > { %566 = vadd.xlane.f32.xlu1 %v565_v5 }
 0x357   : > { %v567_v6 = vpop.xlane.xlu1 %566 }
 0x358   : > { %v568_v7 = vmul.f32 0.03125, %v567_v6 }
 0x35a   : > { %v569_v8 = vadd.f32 1e-05, %v568_v7 }
 0x35c   : > { %722 = vrsqrt.f32 %v569_v8 }
 0x366   : > { %v723_v9 = vpop.eup %722 }
 0x367   : > { %v571_v11 = vmul.f32 %v723_v9, %v563_v3 }
 0x369   : > { %v578_v13 = vmul.f32 %v667_v10, %v571_v11 }
 0x36b   : > { %v585_v15 = vadd.f32 %v668_v12, %v578_v13 }
 0x36d   : > { %v587_v16 = vadd.f32 %v586_v14, %v585_v15 }
 0x36f   : > { %588 = vst.msk [vmem:[%s303_s18] sm:$0xf] %vm557_vm1, %v587_v16 }
 0x370 PF: > { %s18_s27 = sadd.s32 1, %s730_s27  }
 0x371   : > { %p15_p4 = scmp.ge.s32.totalorder %s18_s27, 4  }
 0x373   :  { %17 = sbr.rel (!%p15_p4) target bundleno = 1 (0x1), region = 82 }

// kernel: vit_forward.3
= control target key start
LH: loop header
LB: loop body
LE: loop exit
PB: predicated region body
PF: predicated region fallthrough
CT: control target
= control target key end

     0   :  { %s3825_s0 = inlined_call_operand.vmem [shape: f32[2,5,32], index: 0, kind: input, shape index: {}]   ;;  %s3826_s1 = inlined_call_operand.vmem [shape: f32[2,1,32], index: 1, kind: input, shape index: {}]   ;;  %s3827_s2 = inlined_call_operand.vmem [shape: f32[2,1,32], index: 2, kind: input, shape index: {}]   ;;  %s3828_s3 = inlined_call_operand.vmem [shape: bf16[2,4,32,8], index: 3, kind: input, shape index: {}]   ;;  %s3829_s4 = inlined_call_operand.vmem [shape: bf16[2,4,32,8], index: 4, kind: input, shape index: {}]   ;;  %s3830_s5 = inlined_call_operand.vmem [shape: bf16[2,4,32,8], index: 5, kind: input, shape index: {}]   ;;  %s3831_s6 = inlined_call_operand.vmem [shape: bf16[2,4,8,32], index: 6, kind: input, shape index: {}]   ;;  %s3832_s7 = inlined_call_operand.vmem [shape: f32[2,1,32], index: 7, kind: input, shape index: {}]   ;;  %s3833_s8 = inlined_call_operand.vmem [shape: f32[2,1,32], index: 8, kind: input, shape index: {}]   ;;  %s3834_s9 = inlined_call_operand.vmem [shape: f32[2,1,32], index: 9, kind: input, shape index: {}]   ;;  %s3835_s10 = inlined_call_operand.vmem [shape: bf16[2,32,64], index: 10, kind: input, shape index: {}]   ;;  %s3836_s11 = inlined_call_operand.vmem [shape: f32[2,1,64], index: 11, kind: input, shape index: {}]   ;;  %s3837_s12 = inlined_call_operand.vmem [shape: bf16[2,64,32], index: 12, kind: input, shape index: {}]   ;;  %s3838_s13 = inlined_call_operand.vmem [shape: f32[2,1,32], index: 13, kind: input, shape index: {}]   ;;  %s3839_s14 = inlined_call_operand.vmem [shape: f32[1,32], index: 14, kind: input, shape index: {}]   ;;  %s3840_s15 = inlined_call_operand.vmem [shape: f32[1,32], index: 15, kind: input, shape index: {}]   ;;  %s3841_s16 = inlined_call_operand.vmem [shape: bf16[32,128], index: 16, kind: input, shape index: {}]   ;;  %s3842_s17 = inlined_call_operand.vmem [shape: f32[1,128], index: 17, kind: input, shape index: {}]   ;;  %s3843_s18 = inlined_call_operand.hbm [shape: f32[2,1,128], index: 18, kind: output, shape index: {}]  }
   0x1   :  { %3858 = sst [smem:[#allocation18_spill]] %s3825_s0 }
   0x2   :  { %3859 = sst [smem:[#allocation19_spill]] %s3826_s1 }
   0x3   :  { %3860 = sst [smem:[#allocation20_spill]] %s3827_s2 }
   0x4   :  { %3861 = sst [smem:[#allocation21_spill]] %s3828_s3 }
   0x5   :  { %3862 = sst [smem:[#allocation22_spill]] %s3829_s4 }
   0x6   :  { %3863 = sst [smem:[#allocation23_spill]] %s3830_s5 }
   0x7   :  { %3864 = sst [smem:[#allocation24_spill]] %s3831_s6 }
   0x8   :  { %3865 = sst [smem:[#allocation25_spill]] %s3837_s12 }
   0x9   :  { %3866 = sst [smem:[#allocation26_spill]] %s3839_s14 }
   0xa   :  { %3867 = sst [smem:[#allocation27_spill]] %s3840_s15 }
   0xb   :  { %3868 = sst [smem:[#allocation28_spill]] %s3841_s16 }
   0xc   :  { %3869 = sst [smem:[#allocation29_spill]] %s3842_s17 }
   0xd   :  { %3870 = sst [smem:[#allocation30_spill]] %s3843_s18 }
   0xe   :  { %23 = vsyncpa [#allocation4], 0 }
   0xf   :  { %25 = vsyncpa [#allocation4 + $0x1], 0  ;;  %s3365_s27 = smov 0   ;;  %s3367_s28 = smov 0  }
  0x10   :  { %s3369_s29 = smov 0   ;;  %s3371_s30 = smov 0  }
  0x11   :  { %s3373_s0 = smov 0   ;;  %s3375_s19 = smov 0  }
  0x12   :  { %s3377_s1 = smov 0   ;;  %s3379_s20 = smov 0  }
  0x13 LB: > { %3871 = sst [smem:[#allocation6_spill]] %s3234_s27  ;;  %s2672_s21 = sadd.s32 4294967295, %s3262_s20   ;;  %s3262_s20 = sphi %s3379_s20, %s31_s20   ;;  %s3258_s1 = sphi %s3377_s1, %s3919_s1   ;;  %s3254_s19 = sphi %s3375_s19, %s3918_s19   ;;  %s3250_s0 = sphi %s3373_s0, %s3917_s0   ;;  %s3246_s30 = sphi %s3371_s30, %s3916_s30   ;;  %s3242_s29 = sphi %s3369_s29, %s3915_s29   ;;  %s3238_s28 = sphi %s3367_s28, %s3921_s28   ;;  %s3234_s27 = sphi %s3365_s27, %s3920_s27  }
  0x14   : > { %3872 = sst [smem:[#allocation7_spill]] %s3242_s29  ;;  %s2673_s22 = sadd.s32 4294967294, %s3262_s20  }
  0x15   : > { %3873 = sst [smem:[#allocation8_spill]] %s3246_s30  ;;  %s40_s2 = sadd.s32 1, %s3254_s19 }
  0x16   : > { %3874 = sst [smem:[#allocation9_spill]] %s3250_s0  ;;  %p41_p0 = scmp.ge.s32.totalorder %s40_s2, 2 }
  0x17   : > { %3875 = sst [smem:[#allocation10_spill]] %s3254_s19  ;;  %s43_s23 = sadd.s32 1, %s3258_s1 }
  0x18   : > { %3876 = sst [smem:[#allocation11_spill]] %s3258_s1  ;;  %p508_p1 = scmp.ne.s32.totalorder %s3242_s29, %s3238_s28 }
  0x19   : > { %3877 = sst [smem:[#allocation12_spill]] %s3262_s20  ;;  %p509_p2 = scmp.eq.s32.totalorder %s2672_s21, 3 }
  0x1a   : > { %s3923_s2 = smov (%p41_p0, %s40_s2), 0  ;;  %s3925_s23 = smov (!%p41_p0, %s43_s23), %s3258_s1 }
  0x1b   : > { %3878 = sst [smem:[#allocation13_spill]] %s3923_s2  ;;  %p3414_p3 = por %p509_p2, %p508_p1 }
  0x1c   : > { %p514_p4 = scmp.ne.s32.totalorder %s3238_s28, %s3234_s27  ;;  %p45_p5 = scmp.ge.s32.totalorder %s3925_s23, 2 }
  0x1d   : > { %s3879_s24 = scalar_select %p3414_p3, 1, 0 }
  0x1e   : > { %p515_p6 = scmp.eq.s32.totalorder %s2673_s22, 3  ;;  %p2676_p7 = scmp.ge.s32.totalorder %s3262_s20, 1 }
  0x1f   : > { %3880 = sst [smem:[#allocation14_spill]] %s3879_s24  ;;  %p642_p8 = scmp.lt.s32.totalorder %s3262_s20, 5 }
  0x20   : > { %s3927_s23 = smov (%p45_p5, %s3925_s23), 0  ;;  %p3424_p9 = por %p515_p6, %p514_p4 }
  0x21   : > { %3881 = sst [smem:[#allocation15_spill]] %s3927_s23  ;;  %p643_p10 = pnand %p2676_p7, %p642_p8 }
  0x22   : > { %s3882_s25 = scalar_select %p3424_p9, 1, 0 }
  0x23   : > { %s495_s26 = ssub.s32 %s3258_s1, %s3927_s23  ;;  %s498_s21 = sadd.s32 1, %s3242_s29 }
  0x24   : > { %3883 = sst [smem:[#allocation16_spill]] %s3882_s25  ;;  %p496_p11 = scmp.eq.s32.totalorder %s495_s26, 0 }
  0x25   : > { %646 = sbr.rel (%p643_p10) target bundleno = 2947 (0xb83), region = 92  ;;  %p745_p12 = scmp.lt.s32.totalorder (!%p643_p10), %s3250_s0, 1 }
  0x26   : > { %s3432_s2 = scalar_select %p496_p11, %s3242_s29, %s498_s21  }
  0x27   : > { %p749_p13 = scmp.lt.s32.totalorder (!%p643_p10), %s3246_s30, 1  ;;  %s3885_s1 = sld [smem:[#allocation18_spill]] (!%p643_p10) }
  0x28   : > { %3884 = sst [smem:[#allocation17_spill]] %s3432_s2  ;;  %s3888_s3 = sld [smem:[#allocation21_spill]] (!%p643_p10) }
  0x29   : > { %s3889_s4 = sld [smem:[#allocation22_spill]] (!%p643_p10)  ;;  %s3890_s5 = sld [smem:[#allocation23_spill]] (!%p643_p10) }
  0x2a   : > { %s3891_s6 = sld [smem:[#allocation24_spill]] (!%p643_p10)  ;;  %s3892_s12 = sld [smem:[#allocation25_spill]] (!%p643_p10) }
  0x2b   : > { %s3893_s20 = sand.u32 (!%p643_p10), 1, %s3238_s28  }
  0x2c   : > { %s746_s19 = scalar_select %p745_p12, %s3250_s0, 1 }
  0x2d   : > { %s3439_s27 = scalar_select %p749_p13, %s3246_s30, 1 }
  0x2e   : > { %s2677_s26 = sshll.u32 %s746_s19, 3  ;;  %s3507_s19 = scalar_lea.vmem [#allocation3], %s3893_s20 }
  0x2f   : > { %s748_s22 = scalar_lea.vmem %s3885_s1, %s2677_s26  ;;  %s2761_s15 = sshll.u32 %s3439_s27, 6 }
  0x30   : > { %s3456_s30 = scalar_lea.vmem %s3888_s3, %s2761_s15  ;;  %s3461_s23 = scalar_lea.vmem %s3889_s4, %s2761_s15 }
  0x31   : > { %s3466_s29 = scalar_lea.vmem %s3890_s5, %s2761_s15  ;;  %s2764_s2 = sshll.u32 %s3439_s27, 4 }
  0x32   : > { %s3472_s0 = scalar_lea.vmem %s3891_s6, %s2764_s2  ;;  %s783_s1 = scalar_lea.vmem %s3834_s9, %s3439_s27 }
  0x33   : > { %s3489_s3 = scalar_lea.vmem %s3835_s10, %s2764_s2  ;;  %s791_s4 = scalar_lea.vmem %s3836_s11, %s3439_s27 }
  0x34   : > { %s2766_s5 = sshll.u32 %s3439_s27, 5  ;;  %s799_s16 = scalar_lea.vmem %s3838_s13, %s3439_s27 }
  0x35   : > { %s3503_s6 = scalar_lea.vmem %s3892_s12, %s2766_s5  ;;  %s3894_s15 = sld [smem:[#allocation8_spill]] }
  0x3b   : > { %p2690_p0 = scmp.ne.s32.totalorder %s3894_s15, 0 }
  0x3c   : > { %v805_v0 = vld [vmem:[%s748_s22] sm:$0x1f] (!%p2690_p0)  ;;  %vm806_vm0 = vcmask (!%p2690_p0), 258048  }
  0x3d   : > { %804 = sbr.rel (%p2690_p0) target bundleno = 68 (0x44), region = 96  ;;  %807 = vst.msk [vmem:[#allocation2] sm:$0x1f] (!%p2690_p0), %vm806_vm0, %v805_v0 }
  0x44 PF: > { %v3510_v1 = vld [vmem:[#allocation2] sm:$0x1f]  ;;  %vm811_vm1 = vcmask 258048   ;;  %v3111_v9 = vld [vmem:[%s3456_s30 + $0x10] sm:$0xff]   ;;  %v3264_v10 = vmov 0.0   ;;  %v3112_v11 = vld [vmem:[%s3456_s30 + $0x8] sm:$0xff]   ;;  %s3900_s17 = scalar_lea.vmem %s3833_s8, %s3439_s27 }
  0x45   : > { %v812_v2 = vsel %vm811_vm1, %v3510_v1, 0.0  ;;  %v3110_v8 = vld [vmem:[%s3456_s30] sm:$0xff]   ;;  %2838 = vmatprep.subr.bf16.mxu0 %v3264_v10  ;;  %2846 = vmatprep.subr.bf16.mxu1 %v3264_v10  ;;  %v3113_v12 = vld [vmem:[%s3456_s30 + $0x18] sm:$0xff]   ;;  %vm3265_vm2 = vmmov 0   ;;  %s3895_s2 = sld [smem:[#allocation19_spill]]  ;;  %s3897_s24 = sld [smem:[#allocation20_spill]] }
  0x46   : > { %813 = vadd.xlane.f32.xlu0 %v812_v2  ;;  %2839 = vmatpush3.bf16.msra.mxu0 %v3110_v8  ;;  %vm869_vm3 = vcmask 261120   ;;  %v3114_v22 = vld [vmem:[%s3456_s30 + $0x20] sm:$0xff]   ;;  %v3115_v23 = vld [vmem:[%s3456_s30 + $0x30] sm:$0xff]   ;;  %v3116_v25 = vld [vmem:[%s3456_s30 + $0x28] sm:$0xff]   ;;  %vm1529_vm4 = vcmask 64512   ;;  %vm1771_vm5 = vcmask 1041408  }
  0x47   : > { %2847 = vmatpush3.bf16.msra.mxu1 %v3111_v9  ;;  %2840 = vmatprep.subr.bf16.mxu0 %v3264_v10  ;;  %v3117_v26 = vld [vmem:[%s3456_s30 + $0x38] sm:$0xff]   ;;  %v3118_v27 = vld [vmem:[%s3461_s23] sm:$0xff]   ;;  %v3119_v28 = vld [vmem:[%s3461_s23 + $0x10] sm:$0xff]   ;;  %vm1772_vm6 = vcmask 1042432   ;;  %vm1714_vm7 = vcmask 36864   ;;  %vm1767_vm8 = vcmask 39936  }
  0x48   : > { %2848 = vmatprep.subr.bf16.mxu1 %v3264_v10  ;;  %2842 = vmatprep.mubr.msk.bf16.mxu0 %vm3265_vm2, %v3264_v10  ;;  %v3120_v29 = vld [vmem:[%s3461_s23 + $0x8] sm:$0xff]   ;;  %v3121_v30 = vld [vmem:[%s3461_s23 + $0x18] sm:$0xff]   ;;  %v3122_v31 = vld [vmem:[%s3461_s23 + $0x20] sm:$0xff]   ;;  %vm1967_vm9 = vcmask 1043456   ;;  %vm2328_vm11 = vcmask 523264   ;;  %s3901_s15 = sld [smem:[#allocation8_spill]] }
  0x49   : > { %2850 = vmatprep.mubr.msk.bf16.mxu1 %vm3265_vm2, %v3264_v10  ;;  %v3123_v32 = vld [vmem:[%s3461_s23 + $0x30] sm:$0xff]   ;;  %v3124_v33 = vld [vmem:[%s3461_s23 + $0x28] sm:$0xff]   ;;  %v3125_v34 = vld [vmem:[%s3461_s23 + $0x38] sm:$0xff]  }
  0x4a   : > { %2841 = vmatpush3.bf16.msra.mxu0 %v3112_v11  ;;  %v3126_v35 = vld [vmem:[%s3466_s29] sm:$0xff]   ;;  %v3127_v36 = vld [vmem:[%s3466_s29 + $0x10] sm:$0xff]   ;;  %v3128_v37 = vld [vmem:[%s3466_s29 + $0x8] sm:$0xff]  }
  0x4b   : > { %2849 = vmatpush3.bf16.msra.mxu1 %v3113_v12  ;;  %2854 = vmatprep.subr.bf16.mxu0 %v3264_v10  ;;  %s3896_s12 = scalar_lea.vmem %s3895_s2, %s3439_s27  ;;  %s3898_s25 = scalar_lea.vmem %s3897_s24, %s3439_s27  ;;  %v3129_v38 = vld [vmem:[%s3466_s29 + $0x18] sm:$0xff]   ;;  %v3130_v39 = vld [vmem:[%s3466_s29 + $0x20] sm:$0xff]   ;;  %v3131_v40 = vld [vmem:[%s3466_s29 + $0x30] sm:$0xff]  }
  0x4c   : > { %2862 = vmatprep.subr.bf16.mxu1 %v3264_v10  ;;  %v2691_v17 = vld [vmem:[%s3896_s12] ss:$0 sm:$0xff]  ;;  %v3132_v41 = vld [vmem:[%s3466_s29 + $0x28] sm:$0xff]   ;;  %v3133_v42 = vld [vmem:[%s3466_s29 + $0x38] sm:$0xff]   ;;  %s3899_s29 = scalar_lea.vmem %s3832_s7, %s3439_s27 }
  0x4d   : > { %v2692_v19 = vld [vmem:[%s3898_s25] ss:$0 sm:$0xff] }
  0x4e   : > { %p2754_p1 = scmp.ne.s32.totalorder %s3901_s15, 1 }
  0x4f   : > { %vm2380_vm12 = vcmask (!%p2754_p1), 253952   ;;  %s3902_s5 = sld [smem:[#allocation28_spill]] (!%p2754_p1)  ;;  %vm3268_vm13 = vmmov (!%p2754_p1), 0   ;;  %s3903_s18 = sld [smem:[#allocation26_spill]] (!%p2754_p1) }
  0x50   : > { %s3904_s30 = sld [smem:[#allocation27_spill]] (!%p2754_p1) }
  0xd3   : > { %v814_v3 = vpop.xlane.xlu0 %813 }
  0xd4   : > { %v816_v4 = vmul.f32 0.03125, %v814_v3 }
  0xd6   : > { %v817_v5 = vsub.f32 %v3510_v1, %v816_v4 }
  0xd8   : > { %v818_v6 = vmul.f32 %v817_v5, %v817_v5 }
  0xda   : > { %v819_v7 = vsel %vm811_vm1, %v818_v6, 0.0 }
  0xdb   : > { %820 = vadd.xlane.f32.xlu0 %v819_v7 }
 0x168   : > { %v821_v13 = vpop.xlane.xlu0 %820 }
 0x169   : > { %v822_v14 = vmul.f32 0.03125, %v821_v13 }
 0x16b   : > { %v823_v15 = vadd.f32 1e-05, %v822_v14 }
 0x16d   : > { %3140 = vrsqrt.f32 %v823_v15 }
 0x177   : > { %v3141_v16 = vpop.eup %3140 }
 0x178   : > { %v825_v18 = vmul.f32 %v3141_v16, %v817_v5 }
 0x17a   : > { %v832_v20 = vmul.f32 %v2691_v17, %v825_v18 }
 0x17c   : > { %v839_v21 = vadd.f32 %v2692_v19, %v832_v20 }
 0x17e   : > { %v3542_v24 = vpack.c.bf16 %v839_v21, %v839_v21 }
 0x180   : > { %2843 = vmatmul.mubr.msk.bf16.vlgmr.msra.gmra.mrb[0].mxu0 %vm869_vm3, %v3542_v24  ;;  %2851 = vmatmul.mubr.msk.bf16.vlgmr.msra.gmra.mrb[0].mxu1 %vm869_vm3, %v3542_v24 }
 0x181   : > { %2855 = vmatpush3.bf16.msra.mxu0 %v3114_v22  ;;  %2863 = vmatpush3.bf16.msra.mxu1 %v3115_v23 }
 0x182   : > { %2856 = vmatprep.subr.bf16.mxu0 %v3264_v10  ;;  %2864 = vmatprep.subr.bf16.mxu1 %v3264_v10 }
 0x183   : > { %2858 = vmatprep.mubr.msk.bf16.mxu0 %vm3265_vm2, %v3264_v10  ;;  %2866 = vmatprep.mubr.msk.bf16.mxu1 %vm3265_vm2, %v3264_v10 }
 0x185   : > { %2857 = vmatpush3.bf16.msra.mxu0 %v3116_v25  ;;  %2865 = vmatpush3.bf16.msra.mxu1 %v3117_v26 }
 0x186   : > { %2870 = vmatprep.subr.bf16.mxu0 %v3264_v10  ;;  %2878 = vmatprep.subr.bf16.mxu1 %v3264_v10 }
 0x188   : > { %2859 = vmatmul.mubr.msk.bf16.vlgmr.msra.gmra.mrb[4].mxu0 %vm869_vm3, %v3542_v24  ;;  %2867 = vmatmul.mubr.msk.bf16.vlgmr.msra.gmra.mrb[4].mxu1 %vm869_vm3, %v3542_v24 }
 0x189   : > { %2871 = vmatpush3.bf16.msra.mxu0 %v3118_v27  ;;  %2879 = vmatpush3.bf16.msra.mxu1 %v3119_v28  ;;  %v3266_v27 = vmov 65535  }
 0x18a   : > { %2872 = vmatprep.subr.bf16.mxu0 %v3264_v10  ;;  %2880 = vmatprep.subr.bf16.mxu1 %v3264_v10  ;;  %v1773_v28 = vsel %vm1771_vm5, 4294967295, %v3266_v27 }
 0x18b   : > { %2874 = vmatprep.mubr.msk.bf16.mxu0 %vm3265_vm2, %v3264_v10  ;;  %2882 = vmatprep.mubr.msk.bf16.mxu1 %vm3265_vm2, %v3264_v10 }
 0x18d   : > { %2873 = vmatpush3.bf16.msra.mxu0 %v3120_v29  ;;  %2881 = vmatpush3.bf16.msra.mxu1 %v3121_v30  ;;  %v1774_v30 = vsel %vm1772_vm6, %v1773_v28, 0 }
 0x18e   : > { %2886 = vmatprep.subr.bf16.mxu0 %v3264_v10  ;;  %2894 = vmatprep.subr.bf16.mxu1 %v3264_v10 }
 0x190   : > { %2875 = vmatmul.mubr.msk.bf16.vlgmr.msra.gmra.mrb[8].mxu0 %vm869_vm3, %v3542_v24  ;;  %2883 = vmatmul.mubr.msk.bf16.vlgmr.msra.gmra.mrb[8].mxu1 %vm869_vm3, %v3542_v24 }
 0x191   : > { %2887 = vmatpush3.bf16.msra.mxu0 %v3122_v31  ;;  %2895 = vmatpush3.bf16.msra.mxu1 %v3123_v32 }
 0x192   : > { %2888 = vmatprep.subr.bf16.mxu0 %v3264_v10  ;;  %2896 = vmatprep.subr.bf16.mxu1 %v3264_v10 }
 0x193   : > { %2890 = vmatprep.mubr.msk.bf16.mxu0 %vm3265_vm2, %v3264_v10  ;;  %2898 = vmatprep.mubr.msk.bf16.mxu1 %vm3265_vm2, %v3264_v10 }
 0x195   : > { %2889 = vmatpush3.bf16.msra.mxu0 %v3124_v33  ;;  %2897 = vmatpush3.bf16.msra.mxu1 %v3125_v34 }
 0x196   : > { %2902 = vmatprep.subr.bf16.mxu0 %v3264_v10  ;;  %2910 = vmatprep.subr.bf16.mxu1 %v3264_v10 }
 0x198   : > { %2891 = vmatmul.mubr.msk.bf16.vlgmr.msra.gmra.mrb[12].mxu0 %vm869_vm3, %v3542_v24  ;;  %2899 = vmatmul.mubr.msk.bf16.vlgmr.msra.gmra.mrb[12].mxu1 %vm869_vm3, %v3542_v24 }
 0x199   : > { %2903 = vmatpush3.bf16.msra.mxu0 %v3126_v35  ;;  %2911 = vmatpush3.bf16.msra.mxu1 %v3127_v36 }
 0x19a   : > { %2904 = vmatprep.subr.bf16.mxu0 %v3264_v10  ;;  %2912 = vmatprep.subr.bf16.mxu1 %v3264_v10 }
 0x19b   : > { %2906 = vmatprep.mubr.msk.bf16.mxu0 %vm3265_vm2, %v3264_v10  ;;  %2914 = vmatprep.mubr.msk.bf16.mxu1 %vm3265_vm2, %v3264_v10 }
 0x19d   : > { %2905 = vmatpush3.bf16.msra.mxu0 %v3128_v37  ;;  %2913 = vmatpush3.bf16.msra.mxu1 %v3129_v38 }
 0x19e   : > { %2918 = vmatprep.subr.bf16.mxu0 %v3264_v10  ;;  %2926 = vmatprep.subr.bf16.mxu1 %v3264_v10 }
 0x1a0   : > { %2907 = vmatmul.mubr.msk.bf16.vlgmr.msra.gmra.mrb[16].mxu0 %vm869_vm3, %v3542_v24  ;;  %2915 = vmatmul.mubr.msk.bf16.vlgmr.msra.gmra.mrb[16].mxu1 %vm869_vm3, %v3542_v24 }
 0x1a1   : > { %2919 = vmatpush3.bf16.msra.mxu0 %v3130_v39  ;;  %2927 = vmatpush3.bf16.msra.mxu1 %v3131_v40 }
 0x1a2   : > { %2920 = vmatprep.subr.bf16.mxu0 %v3264_v10  ;;  %2928 = vmatprep.subr.bf16.mxu1 %v3264_v10 }
 0x1a3   : > { %2922 = vmatprep.mubr.msk.bf16.mxu0 %vm3265_vm2, %v3264_v10  ;;  %2930 = vmatprep.mubr.msk.bf16.mxu1 %vm3265_vm2, %v3264_v10 }
 0x1a5   : > { %2921 = vmatpush3.bf16.msra.mxu0 %v3132_v41  ;;  %2929 = vmatpush3.bf16.msra.mxu1 %v3133_v42 }
 0x1a6   : > { %2934 = vmatprep.subr.bf16.mxu0 %v3264_v10  ;;  %2940 = vmatprep.subr.bf16.mxu1 %v3264_v10 }
 0x1a8   : > { %2923 = vmatmul.mubr.msk.bf16.vlgmr.msra.gmra.mrb[20].mxu0 %vm869_vm3, %v3542_v24  ;;  %2931 = vmatmul.mubr.msk.bf16.vlgmr.msra.gmra.mrb[20].mxu1 %vm869_vm3, %v3542_v24 }
 0x1a9   : > { %2936 = vmatprep.mubr.msk.bf16.mxu0 %vm3265_vm2, %v3264_v10  ;;  %2942 = vmatprep.mubr.msk.bf16.mxu1 %vm3265_vm2, %v3264_v10 }
 0x253   : > { %v907_v43 = vpop.f32.mrb[0].mxu0  ;;  %v959_v44 = vpop.f32.mrb[0].mxu1 }
 0x254   : > { %v2844_v45 = vpop.f32.mrb[1].mxu0  ;;  %v2852_v46 = vpop.f32.mrb[1].mxu1  ;;  %v1517_v8 = vmul.f32 0.35355338, %v907_v43  ;;  %v1518_v9 = vmul.f32 0.35355338, %v959_v44 }
 0x255   : > { %v910_v47 = vpop.f32.mrb[2].mxu0  ;;  %v962_v48 = vpop.f32.mrb[2].mxu1 }
 0x256   : > { %v2845_v49 = vpop.f32.mrb[3].mxu0  ;;  %v2853_v50 = vpop.f32.mrb[3].mxu1  ;;  %v1521_v13 = vpack.c.bf16 %v1517_v8, %v1517_v8  ;;  %v1522_v14 = vpack.c.bf16 %v1518_v9, %v1518_v9 }
 0x25b   : > { %v1011_v51 = vpop.f32.mrb[4].mxu0  ;;  %v1063_v52 = vpop.f32.mrb[4].mxu1 }
 0x25c   : > { %v2860_v53 = vpop.f32.mrb[5].mxu0  ;;  %v2868_v54 = vpop.f32.mrb[5].mxu1  ;;  %v1519_v25 = vmul.f32 0.35355338, %v1011_v51  ;;  %v1520_v26 = vmul.f32 0.35355338, %v1063_v52 }
 0x25d   : > { %v1014_v55 = vpop.f32.mrb[6].mxu0  ;;  %v1066_v56 = vpop.f32.mrb[6].mxu1 }
 0x25e   : > { %v2861_v57 = vpop.f32.mrb[7].mxu0  ;;  %v2869_v58 = vpop.f32.mrb[7].mxu1  ;;  %v1523_v32 = vpack.c.bf16 %v1519_v25, %v1519_v25  ;;  %v1524_v33 = vpack.c.bf16 %v1520_v26, %v1520_v26 }
 0x263   : > { %v1131_v59 = vpop.f32.mrb[8].mxu0  ;;  %v1183_v60 = vpop.f32.mrb[8].mxu1 }
 0x264   : > { %v1525_v61 = vpack.c.bf16 %v1131_v59, %v1131_v59  ;;  %v1526_v62 = vpack.c.bf16 %v1183_v60, %v1183_v60  ;;  %v2876_v63 = vpop.f32.mrb[9].mxu0  ;;  %v2884_v0 = vpop.f32.mrb[9].mxu1 }
 0x265   : > { %v1134_v2 = vpop.f32.mrb[10].mxu0  ;;  %v1186_v3 = vpop.f32.mrb[10].mxu1 }
 0x266   : > { %v1534_v4 = vsel %vm1529_vm4, %v1525_v61, 0  ;;  %v1580_v5 = vsel %vm1529_vm4, %v1526_v62, 0  ;;  %v2877_v6 = vpop.f32.mrb[11].mxu0  ;;  %v2885_v7 = vpop.f32.mrb[11].mxu1 }
 0x267   : > { %2935 = vmatpush3.bf16.xpose.msra.mxu0 %v1534_v4  ;;  %2941 = vmatpush3.bf16.xpose.msra.mxu1 %v1580_v5 }
 0x268   : > { %2946 = vmatprep.subr.bf16.mxu0 %v3264_v10  ;;  %2952 = vmatprep.subr.bf16.mxu1 %v3264_v10 }
 0x26b   : > { %v1235_v11 = vpop.f32.mrb[12].mxu0  ;;  %v1287_v12 = vpop.f32.mrb[12].mxu1 }
 0x26c   : > { %v1527_v15 = vpack.c.bf16 %v1235_v11, %v1235_v11  ;;  %v1528_v16 = vpack.c.bf16 %v1287_v12, %v1287_v12  ;;  %v2892_v17 = vpop.f32.mrb[13].mxu0  ;;  %v2900_v18 = vpop.f32.mrb[13].mxu1 }
 0x26d   : > { %v1238_v19 = vpop.f32.mrb[14].mxu0  ;;  %v1290_v20 = vpop.f32.mrb[14].mxu1 }
 0x26e   : > { %v1626_v21 = vsel %vm1529_vm4, %v1527_v15, 0  ;;  %v1672_v22 = vsel %vm1529_vm4, %v1528_v16, 0  ;;  %v2893_v23 = vpop.f32.mrb[15].mxu0  ;;  %v2901_v24 = vpop.f32.mrb[15].mxu1  ;;  %2937 = vmatmul.mubr.msk.bf16.vlgmr.msra.gmra.mrb[24].mxu0 %vm1529_vm4, %v1521_v13  ;;  %2943 = vmatmul.mubr.msk.bf16.vlgmr.msra.gmra.mrb[24].mxu1 %vm1529_vm4, %v1522_v14 }
 0x26f   : > { %2947 = vmatpush3.bf16.xpose.msra.mxu0 %v1626_v21  ;;  %2953 = vmatpush3.bf16.xpose.msra.mxu1 %v1672_v22 }
 0x270   : > { %2948 = vmatprep.mubr.msk.bf16.mxu0 %vm3265_vm2, %v3264_v10  ;;  %2954 = vmatprep.mubr.msk.bf16.mxu1 %vm3265_vm2, %v3264_v10 }
 0x271   : > { %2958 = vmatprep.subr.bf16.mxu0 %v3264_v10  ;;  %2964 = vmatprep.subr.bf16.mxu1 %v3264_v10 }
 0x273   : > { %v1355_v29 = vpop.f32.mrb[16].mxu0  ;;  %v1407_v31 = vpop.f32.mrb[16].mxu1 }
 0x274   : > { %v1763_v34 = vpack.c.bf16 %v1355_v29, %v1355_v29  ;;  %v1764_v35 = vpack.c.bf16 %v1407_v31, %v1407_v31  ;;  %v2908_v36 = vpop.f32.mrb[17].mxu0  ;;  %v2916_v37 = vpop.f32.mrb[17].mxu1 }
 0x275   : > { %v1358_v38 = vpop.f32.mrb[18].mxu0  ;;  %v1410_v39 = vpop.f32.mrb[18].mxu1 }
 0x276   : > { %v1776_v40 = vand.u32 %v1774_v30, %v1763_v34  ;;  %v1822_v41 = vand.u32 %v1774_v30, %v1764_v35  ;;  %v2909_v42 = vpop.f32.mrb[19].mxu0  ;;  %v2917_v43 = vpop.f32.mrb[19].mxu1  ;;  %2949 = vmatmul.mubr.msk.bf16.vlgmr.msra.gmra.mrb[28].mxu0 %vm1529_vm4, %v1523_v32  ;;  %2955 = vmatmul.mubr.msk.bf16.vlgmr.msra.gmra.mrb[28].mxu1 %vm1529_vm4, %v1524_v33 }
 0x277   : > { %2960 = vmatprep.mubr.msk.bf16.mxu0 %vm3265_vm2, %v3264_v10  ;;  %2966 = vmatprep.mubr.msk.bf16.mxu1 %vm3265_vm2, %v3264_v10 }
 0x278   : > { %2959 = vmatpush3.bf16.msra.mxu0 %v1776_v40  ;;  %2965 = vmatpush3.bf16.msra.mxu1 %v1822_v41 }
 0x279   : > { %2970 = vmatprep.subr.bf16.mxu0 %v3264_v10  ;;  %2976 = vmatprep.subr.bf16.mxu1 %v3264_v10 }
 0x27b   : > { %v1459_v44 = vpop.f32.mrb[20].mxu0  ;;  %v1511_v45 = vpop.f32.mrb[20].mxu1 }
 0x27c   : > { %v1765_v46 = vpack.c.bf16 %v1459_v44, %v1459_v44  ;;  %v1766_v47 = vpack.c.bf16 %v1511_v45, %v1511_v45  ;;  %v2924_v48 = vpop.f32.mrb[21].mxu0  ;;  %v2932_v49 = vpop.f32.mrb[21].mxu1 }
 0x27d   : > { %v1462_v50 = vpop.f32.mrb[22].mxu0  ;;  %v1514_v51 = vpop.f32.mrb[22].mxu1 }
 0x27e   : > { %v3652_v52 = vand.u32 %v1774_v30, %v1765_v46  ;;  %v3654_v53 = vand.u32 %v1774_v30, %v1766_v47  ;;  %v2925_v54 = vpop.f32.mrb[23].mxu0  ;;  %v2933_v55 = vpop.f32.mrb[23].mxu1  ;;  %v1960_v46 = vld [vmem:[%s3472_s0] sm:$0xf] }
 0x27f   : > { %v1969_v50 = vsel %vm1967_vm9, %v1960_v46, 0  ;;  %v1962_v54 = vld [vmem:[%s3472_s0 + $0x8] sm:$0xf] }
 0x341   : > { %v1570_v56 = vpop.f32.mrb[24].mxu0  ;;  %v1616_v57 = vpop.f32.mrb[24].mxu1 }
 0x342   : > { %v2938_v58 = vpop.f32.mrb[25].mxu0  ;;  %v2944_v59 = vpop.f32.mrb[25].mxu1  ;;  %v1715_v60 = vsel %vm1714_vm7, %v1570_v56, -inf  ;;  %v1718_v2 = vsel %vm1714_vm7, %v1616_v57, -inf }
 0x343   : > { %v1619_v61 = vpop.f32.mrb[26].mxu1  ;;  %1716 = vmax.xlane.f32.xlu1 %v1715_v60  ;;  %v1573_v62 = vpop.f32.mrb[26].mxu0  ;;  %v2061_v58 = vsel %vm1967_vm9, %v1962_v54, 0  ;;  %v1963_v60 = vld [vmem:[%s3472_s0 + $0xc] sm:$0xf] }
 0x344   : > { %v2939_v63 = vpop.f32.mrb[27].mxu0  ;;  %v2945_v0 = vpop.f32.mrb[27].mxu1 }
 0x347   : > { %1719 = vmax.xlane.f32.xlu1 %v1718_v2  ;;  %v2107_v2 = vsel %vm1967_vm9, %v1963_v60, 0  ;;  %v3137_v60 = vld [vmem:[%s3503_s6 + $0x8] sm:$0xff]  }
 0x349   : > { %v1662_v3 = vpop.f32.mrb[28].mxu0  ;;  %v1708_v4 = vpop.f32.mrb[28].mxu1 }
 0x34a   : > { %v2950_v5 = vpop.f32.mrb[29].mxu0  ;;  %v2956_v6 = vpop.f32.mrb[29].mxu1  ;;  %v1724_v7 = vsel %vm1714_vm7, %v1708_v4, -inf  ;;  %v1721_v8 = vsel %vm1714_vm7, %v1662_v3, -inf }
 0x34b   : > { %v1711_v9 = vpop.f32.mrb[30].mxu1  ;;  %1725 = vmax.xlane.f32.xlu1 %v1724_v7  ;;  %1722 = vmax.xlane.f32.xlu0 %v1721_v8  ;;  %v1665_v11 = vpop.f32.mrb[30].mxu0 }
 0x34c   : > { %v2951_v12 = vpop.f32.mrb[31].mxu0  ;;  %v2957_v13 = vpop.f32.mrb[31].mxu1 }
 0x3d0   : > { %v1717_v14 = vpop.xlane.xlu1 %1716 }
 0x3d1   : > { %v1727_v15 = vsub.f32 %v1570_v56, %v1717_v14 }
 0x3d3   : > { %v1731_v16 = vmul.f32 1.442695, %v1727_v15 }
 0x3d4   : > { %v1720_v17 = vpop.xlane.xlu1 %1719 }
 0x3d5   : > { %3142 = vpow2.f32 %v1731_v16  ;;  %v1728_v18 = vsub.f32 %v1616_v57, %v1720_v17 }
 0x3d7   : > { %v1733_v19 = vmul.f32 1.442695, %v1728_v18 }
 0x3d8   : > { %v1726_v20 = vpop.xlane.xlu1 %1725  ;;  %v1723_v21 = vpop.xlane.xlu0 %1722 }
 0x3d9   : > { %3144 = vpow2.f32 %v1733_v19  ;;  %v1730_v22 = vsub.f32 %v1708_v4, %v1726_v20  ;;  %v1729_v23 = vsub.f32 %v1662_v3, %v1723_v21 }
 0x3db   : > { %v1737_v24 = vmul.f32 1.442695, %v1730_v22  ;;  %v1735_v25 = vmul.f32 1.442695, %v1729_v23 }
 0x3dd   : > { %3146 = vpow2.f32 %v1737_v24 }
 0x3de   : > { %3148 = vpow2.f32 %v1735_v25 }
 0x3df   : > { %v3143_v26 = vpop.eup %3142 }
 0x3e0   : > { %v1739_v27 = vsel %vm1714_vm7, %v3143_v26, 0.0 }
 0x3e1   : > { %1740 = vadd.xlane.f32.xlu0 %v1739_v27 }
 0x3e3   : > { %v3145_v28 = vpop.eup %3144 }
 0x3e4   : > { %v1742_v29 = vsel %vm1714_vm7, %v3145_v28, 0.0 }
 0x3e5   : > { %1743 = vadd.xlane.f32.xlu1 %v1742_v29 }
 0x3e7   : > { %v3147_v30 = vpop.eup %3146 }
 0x3e8   : > { %v3149_v31 = vpop.eup %3148  ;;  %v1748_v32 = vsel %vm1714_vm7, %v3147_v30, 0.0 }
 0x3e9   : > { %1749 = vadd.xlane.f32.xlu1 %v1748_v32  ;;  %v1745_v33 = vsel %vm1714_vm7, %v3149_v31, 0.0 }
 0x3ea   : > { %1746 = vadd.xlane.f32.xlu0 %v1745_v33 }
 0x46e   : > { %v1741_v34 = vpop.xlane.xlu0 %1740 }
 0x46f   : > { %3150 = vrcp.f32 %v1741_v34 }
 0x472   : > { %v1744_v35 = vpop.xlane.xlu1 %1743 }
 0x473   : > { %3152 = vrcp.f32 %v1744_v35  ;;  %v2741_v35 = vld [vmem:[%s3899_s29] ss:$0 sm:$0xff] }
 0x476   : > { %v1750_v36 = vpop.xlane.xlu1 %1749 }
 0x477   : > { %3154 = vrcp.f32 %v1750_v36  ;;  %v1747_v37 = vpop.xlane.xlu0 %1746 }
 0x478   : > { %3156 = vrcp.f32 %v1747_v37 }
 0x479   : > { %v3151_v38 = vpop.eup %3150 }
 0x47a   : > { %v1752_v39 = vmul.f32 %v3151_v38, %v3143_v26 }
 0x47c   : > { %v1759_v40 = vpack.c.bf16 %v1752_v39, %v1752_v39 }
 0x47d   : > { %v3153_v41 = vpop.eup %3152 }
 0x47e   : > { %v1754_v42 = vmul.f32 %v3153_v41, %v3145_v28  ;;  %2961 = vmatmul.mubr.msk.bf16.vlgmr.msra.gmra.mrb[32].mxu0 %vm1767_vm8, %v1759_v40 }
 0x47f   : > { %2971 = vmatpush3.bf16.msra.mxu0 %v3652_v52  ;;  %2972 = vmatprep.mubr.msk.bf16.mxu0 %vm3265_vm2, %v3264_v10  ;;  %v1961_v52 = vld [vmem:[%s3472_s0 + $0x4] sm:$0xf]  ;;  %s3905_s0 = sld [smem:[#allocation29_spill]] (!%p2754_p1) }
 0x480   : > { %v1760_v43 = vpack.c.bf16 %v1754_v42, %v1754_v42  ;;  %2982 = vmatprep.subr.bf16.mxu0 %v3264_v10 }
 0x481   : > { %v3155_v44 = vpop.eup %3154 }
 0x482   : > { %v3157_v45 = vpop.eup %3156  ;;  %2967 = vmatmul.mubr.msk.bf16.vlgmr.msra.gmra.mrb[32].mxu1 %vm1767_vm8, %v1760_v43  ;;  %v1758_v48 = vmul.f32 %v3155_v44, %v3147_v30 }
 0x483   : > { %v1756_v47 = vmul.f32 %v3157_v45, %v3149_v31  ;;  %2977 = vmatpush3.bf16.msra.mxu1 %v3654_v53  ;;  %2978 = vmatprep.mubr.msk.bf16.mxu1 %vm3265_vm2, %v3264_v10  ;;  %v2015_v53 = vsel %vm1967_vm9, %v1961_v52, 0 }
 0x484   : > { %2988 = vmatprep.subr.bf16.mxu1 %v3264_v10  ;;  %v1762_v51 = vpack.c.bf16 %v1758_v48, %v1758_v48  ;;  %v3134_v48 = vld [vmem:[%s3489_s3] sm:$0xff]  }
 0x485   : > { %v1761_v49 = vpack.c.bf16 %v1756_v47, %v1756_v47 }
 0x487   : > { %2973 = vmatmul.mubr.msk.bf16.vlgmr.msra.gmra.mrb[36].mxu0 %vm1767_vm8, %v1761_v49  ;;  %v3135_v49 = vld [vmem:[%s3489_s3 + $0x8] sm:$0xff]  }
 0x488   : > { %2983 = vmatpush3.bf16.msra.mxu0 %v1969_v50  ;;  %2984 = vmatprep.mubr.msk.bf16.mxu0 %vm3265_vm2, %v3264_v10 }
 0x489   : > { %2994 = vmatprep.subr.bf16.mxu0 %v3264_v10 }
 0x48a   : > { %2979 = vmatmul.mubr.msk.bf16.vlgmr.msra.gmra.mrb[36].mxu1 %vm1767_vm8, %v1762_v51 }
 0x48b   : > { %2990 = vmatprep.mubr.msk.bf16.mxu1 %vm3265_vm2, %v3264_v10  ;;  %2989 = vmatpush3.bf16.msra.mxu1 %v2015_v53  ;;  %v2742_v53 = vld [vmem:[%s3900_s17] ss:$0 sm:$0xff] }
 0x48c   : > { %3000 = vmatprep.subr.bf16.mxu1 %v3264_v10 }
 0x551   : > { %v1812_v55 = vpop.f32.mrb[32].mxu0 }
 0x552   : > { %v1956_v56 = vpack.c.bf16 %v1812_v55, %v1812_v55  ;;  %v2962_v57 = vpop.f32.mrb[33].mxu0  ;;  %v2743_v55 = vld [vmem:[%s783_s1] ss:$0 sm:$0xff] }
 0x553   : > { %v1815_v59 = vpop.f32.mrb[34].mxu0 }
 0x554   : > { %v2963_v61 = vpop.f32.mrb[35].mxu0  ;;  %2985 = vmatmul.mubr.msk.bf16.vlgmr.msra.gmra.mrb[40].mxu0 %vm1529_vm4, %v1956_v56  ;;  %v3136_v59 = vld [vmem:[%s3503_s6] sm:$0xff]  }
 0x555   : > { %v1858_v62 = vpop.f32.mrb[32].mxu1  ;;  %2995 = vmatpush3.bf16.msra.mxu0 %v2061_v58  ;;  %2996 = vmatprep.mubr.msk.bf16.mxu0 %vm3265_vm2, %v3264_v10  ;;  %v3138_v61 = vld [vmem:[%s3503_s6 + $0x10] sm:$0xff]  }
 0x556   : > { %v1957_v63 = vpack.c.bf16 %v1858_v62, %v1858_v62  ;;  %v2968_v0 = vpop.f32.mrb[33].mxu1  ;;  %3006 = vmatprep.subr.bf16.mxu0 %v3264_v10  ;;  %v3139_v62 = vld [vmem:[%s3503_s6 + $0x18] sm:$0xff]  }
 0x557   : > { %v1861_v3 = vpop.f32.mrb[34].mxu1 }
 0x558   : > { %v2969_v4 = vpop.f32.mrb[35].mxu1  ;;  %2991 = vmatmul.mubr.msk.bf16.vlgmr.msra.gmra.mrb[40].mxu1 %vm1529_vm4, %v1957_v63  ;;  %v2744_v63 = vld [vmem:[%s791_s4] ss:$0 sm:$0xff] }
 0x559   : > { %3001 = vmatpush3.bf16.msra.mxu1 %v2107_v2  ;;  %3002 = vmatprep.mubr.msk.bf16.mxu1 %vm3265_vm2, %v3264_v10 }
 0x55a   : > { %v1904_v5 = vpop.f32.mrb[36].mxu0  ;;  %3014 = vmatprep.subr.bf16.mxu1 %v3264_v10 }
 0x55b   : > { %v1958_v6 = vpack.c.bf16 %v1904_v5, %v1904_v5  ;;  %v2974_v7 = vpop.f32.mrb[37].mxu0 }
 0x55c   : > { %v1907_v8 = vpop.f32.mrb[38].mxu0 }
 0x55d   : > { %v2975_v9 = vpop.f32.mrb[39].mxu0  ;;  %2997 = vmatmul.mubr.msk.bf16.vlgmr.msra.gmra.mrb[44].mxu0 %vm1529_vm4, %v1958_v6  ;;  %v1950_v11 = vpop.f32.mrb[36].mxu1 }
 0x55e   : > { %v1959_v12 = vpack.c.bf16 %v1950_v11, %v1950_v11  ;;  %v2980_v13 = vpop.f32.mrb[37].mxu1  ;;  %3010 = vmatprep.mubr.msk.bf16.mxu0 %vm3265_vm2, %v3264_v10  ;;  %3007 = vmatpush3.bf16.msra.mxu0 %v3134_v48 }
 0x55f   : > { %v1953_v14 = vpop.f32.mrb[38].mxu1  ;;  %3008 = vmatprep.subr.bf16.mxu0 %v3264_v10 }
 0x560   : > { %v2981_v15 = vpop.f32.mrb[39].mxu1  ;;  %3003 = vmatmul.mubr.msk.bf16.vlgmr.msra.gmra.mrb[44].mxu1 %vm1529_vm4, %v1959_v12 }
 0x561   : > { %3022 = vmatprep.mubr.msk.bf16.mxu1 %vm3265_vm2, %v3264_v10  ;;  %3015 = vmatpush3.bf16.msra.mxu1 %v3136_v59 }
 0x562   : > { %3009 = vmatpush3.bf16.msra.mxu0 %v3135_v49  ;;  %3016 = vmatprep.subr.bf16.mxu1 %v3264_v10 }
 0x565   : > { %3017 = vmatpush3.bf16.msra.mxu1 %v3137_v60 }
 0x566   : > { %3018 = vmatprep.subr.bf16.mxu1 %v3264_v10 }
 0x569   : > { %3019 = vmatpush3.bf16.msra.mxu1 %v3138_v61 }
 0x56a   : > { %3020 = vmatprep.subr.bf16.mxu1 %v3264_v10 }
 0x56d   : > { %3021 = vmatpush3.bf16.msra.mxu1 %v3139_v62 }
 0x627   : > { %v2005_v16 = vpop.f32.mrb[40].mxu0 }
 0x628   : > { %v2986_v17 = vpop.f32.mrb[41].mxu0  ;;  %v2149_v21 = vsel %vm811_vm1, %v2005_v16, 0.0 }
 0x629   : > { %v2008_v18 = vpop.f32.mrb[42].mxu0 }
 0x62a   : > { %v2987_v19 = vpop.f32.mrb[43].mxu0 }
 0x62b   : > { %v2051_v20 = vpop.f32.mrb[40].mxu1 }
 0x62c   : > { %v2150_v22 = vsel %vm811_vm1, %v2051_v20, 0.0  ;;  %v2992_v23 = vpop.f32.mrb[41].mxu1 }
 0x62d   : > { %v2151_v24 = vadd.f32 %v2150_v22, %v2149_v21  ;;  %v2054_v25 = vpop.f32.mrb[42].mxu1 }
 0x62e   : > { %v2993_v26 = vpop.f32.mrb[43].mxu1 }
 0x630   : > { %v2097_v27 = vpop.f32.mrb[44].mxu0 }
 0x631   : > { %v2152_v28 = vsel %vm811_vm1, %v2097_v27, 0.0  ;;  %v2998_v29 = vpop.f32.mrb[45].mxu0 }
 0x632   : > { %v2153_v30 = vadd.f32 %v2152_v28, %v2151_v24  ;;  %v2100_v31 = vpop.f32.mrb[46].mxu0 }
 0x633   : > { %v2999_v32 = vpop.f32.mrb[47].mxu0  ;;  %v2143_v33 = vpop.f32.mrb[44].mxu1 }
 0x634   : > { %v2154_v34 = vsel %vm811_vm1, %v2143_v33, 0.0  ;;  %v3004_v36 = vpop.f32.mrb[45].mxu1  ;;  %v2748_v32 = vld [vmem:[%s799_s16] ss:$0 sm:$0xff] }
 0x635   : > { %v2155_v37 = vadd.f32 %v2154_v34, %v2153_v30  ;;  %v2146_v38 = vpop.f32.mrb[46].mxu1 }
 0x636   : > { %v3005_v39 = vpop.f32.mrb[47].mxu1 }
 0x637   : > { %v2163_v40 = vadd.f32 %v2741_v35, %v2155_v37 }
 0x639   : > { %v3714_v41 = vadd.f32 %v2163_v40, %v3510_v1 }
 0x63b   : > { %v2167_v42 = vsel %vm811_vm1, %v3714_v41, 0.0 }
 0x63c   : > { %2168 = vadd.xlane.f32.xlu0 %v2167_v42 }
 0x6c9   : > { %v2169_v43 = vpop.xlane.xlu0 %2168 }
 0x6ca   : > { %v2170_v44 = vmul.f32 0.03125, %v2169_v43 }
 0x6cc   : > { %v2171_v45 = vsub.f32 %v3714_v41, %v2170_v44 }
 0x6ce   : > { %v2172_v46 = vmul.f32 %v2171_v45, %v2171_v45 }
 0x6d0   : > { %v2173_v47 = vsel %vm811_vm1, %v2172_v46, 0.0  ;;  %v3164_v46 = vld [vmem:[%s3902_s5] sm:$0xff] (!%p2754_p1)  }
 0x6d1   : > { %2174 = vadd.xlane.f32.xlu1 %v2173_v47  ;;  %v3165_v47 = vld [vmem:[%s3902_s5 + $0x8] sm:$0xff] (!%p2754_p1)  }
 0x75e   : > { %v2175_v1 = vpop.xlane.xlu1 %2174 }
 0x75f   : > { %v2176_v50 = vmul.f32 0.03125, %v2175_v1 }
 0x761   : > { %v2177_v51 = vadd.f32 1e-05, %v2176_v50 }
 0x763   : > { %3158 = vrsqrt.f32 %v2177_v51  ;;  %v2378_v51 = vld [vmem:[%s3903_s18] sm:$0x1] (!%p2754_p1) }
 0x76d   : > { %v3159_v52 = vpop.eup %3158 }
 0x76e   : > { %v2179_v54 = vmul.f32 %v3159_v52, %v2171_v45 }
 0x770   : > { %v2186_v56 = vmul.f32 %v2742_v53, %v2179_v54  ;;  %v2379_v53 = vld [vmem:[%s3904_s30] sm:$0x1] (!%p2754_p1) }
 0x772   : > { %v2193_v57 = vadd.f32 %v2743_v55, %v2186_v56 }
 0x774   : > { %v2194_v58 = vpack.c.bf16 %v2193_v57, %v2193_v57  ;;  %v2401_v57 = vld [vmem:[%s3905_s0] sm:$0x1] (!%p2754_p1) }
 0x776   : > { %3011 = vmatmul.mubr.msk.bf16.vlgmr.msra.gmra.mrb[48].mxu0 %vm869_vm3, %v2194_v58 }
 0x849   : > { %v2255_v0 = vpop.f32.mrb[48].mxu0 }
 0x84a   : > { %v2256_v2 = vadd.f32 %v2744_v63, %v2255_v0  ;;  %v3012_v3 = vpop.f32.mrb[49].mxu0 }
 0x84b   : > { %v2258_v4 = vpop.f32.mrb[50].mxu0 }
 0x84c   : > { %v2262_v5 = vmul.f32 0.70710677, %v2256_v2  ;;  %v3013_v6 = vpop.f32.mrb[51].mxu0  ;;  %v2261_v28 = vmul.f32 0.5, %v2256_v2 }
 0x84e   : > { %v2263_v7 = vand.u32 2147483647, %v2262_v5  ;;  %vm2283_vm10 = vcmp.ge.f32.partialorder %v2262_v5, 0.0 }
 0x850   : > { %v2264_v8 = vmul.f32 0.3275911, %v2263_v7  ;;  %v2277_v11 = vsub.f32 0.0, %v2263_v7 }
 0x852   : > { %v2265_v9 = vadd.f32 1.0, %v2264_v8  ;;  %v2278_v10 = vmul.f32 %v2277_v11, %v2263_v7 }
 0x854   : > { %3160 = vrcp.f32 %v2265_v9  ;;  %v2279_v15 = vmul.f32 1.442695, %v2278_v10 }
 0x856   : > { %3162 = vpow2.f32 %v2279_v15 }
 0x85e   : > { %v3161_v12 = vpop.eup %3160 }
 0x85f   : > { %v2268_v13 = vmul.f32 1.0614054, %v3161_v12 }
 0x860   : > { %v3163_v23 = vpop.eup %3162 }
 0x861   : > { %v2269_v14 = vadd.f32 -1.4531521, %v2268_v13 }
 0x863   : > { %v2270_v16 = vmul.f32 %v3161_v12, %v2269_v14 }
 0x865   : > { %v2271_v17 = vadd.f32 1.4214138, %v2270_v16 }
 0x867   : > { %v2272_v18 = vmul.f32 %v3161_v12, %v2271_v17 }
 0x869   : > { %v2273_v19 = vadd.f32 -0.28449672, %v2272_v18 }
 0x86b   : > { %v2274_v20 = vmul.f32 %v3161_v12, %v2273_v19 }
 0x86d   : > { %v2275_v21 = vadd.f32 0.2548296, %v2274_v20 }
 0x86f   : > { %v2276_v22 = vmul.f32 %v3161_v12, %v2275_v21 }
 0x871   : > { %v2281_v24 = vmul.f32 %v3163_v23, %v2276_v22 }
 0x873   : > { %v2282_v25 = vsub.f32 1.0, %v2281_v24 }
 0x875   : > { %v2284_v26 = vsub.f32 0.0, %v2282_v25 }
 0x877   : > { %v2285_v27 = vsel %vm2283_vm10, %v2282_v25, %v2284_v26 }
 0x878   : > { %v2286_v29 = vadd.f32 1.0, %v2285_v27 }
 0x87a   : > { %v2287_v30 = vmul.f32 %v2286_v29, %v2261_v28 }
 0x87c   : > { %v2288_v31 = vpack.c.bf16 %v2287_v30, %v2287_v30 }
 0x87e   : > { %3023 = vmatmul.mubr.msk.bf16.vlgmr.msra.gmra.mrb[48].mxu1 %vm2328_vm11, %v2288_v31 }
 0x950   : > { %2377 = sbr.rel (%p2754_p1) target bundleno = 2920 (0xb68), region = 100 }
 0x951   : > { %v2366_v33 = vpop.f32.mrb[48].mxu1 }
 0x952   : > { %v2367_v34 = vadd.f32 %v2748_v32, %v2366_v33  ;;  %v3024_v35 = vpop.f32.mrb[49].mxu1 }
 0x953   : > { %v2369_v36 = vpop.f32.mrb[50].mxu1 }
 0x954   : > { %v2372_v37 = vadd.f32 %v2367_v34, %v3714_v41  ;;  %v3025_v38 = vpop.f32.mrb[51].mxu1  ;;  %v3267_v41 = vmov (!%p2754_p1), 0.0  }
 0x955   : > { %3026 = vmatprep.subr.bf16.mxu0 (!%p2754_p1), %v3267_v41  ;;  %3030 = vmatprep.mubr.msk.bf16.mxu0 (!%p2754_p1), %vm3268_vm13, %v3267_v41 }
 0x956   : > { %2373 = vst.msk [vmem:[#allocation2] sm:$0x1f] %vm811_vm1, %v2372_v37  ;;  %v2381_v39 = vsel (!%p2754_p1), %vm2380_vm12, %v2372_v37, 0.0  ;;  %3027 = vmatpush3.bf16.msra.mxu0 (!%p2754_p1), %v3164_v46 }
 0x957   : > { %2382 = vadd.xlane.f32.xlu0 %v2381_v39  ;;  %3028 = vmatprep.subr.bf16.mxu0 %v3267_v41 }
 0x95a   : > { %3029 = vmatpush3.bf16.msra.mxu0 %v3165_v47 }
 0x9e4   : > { %v2383_v40 = vpop.xlane.xlu0 %2382 }
 0x9e5   : > { %v2384_v42 = vmul.f32 0.03125, %v2383_v40 }
 0x9e7   : > { %v2385_v43 = vsub.f32 %v2372_v37, %v2384_v42 }
 0x9e9   : > { %v2386_v44 = vmul.f32 %v2385_v43, %v2385_v43 }
 0x9eb   : > { %v2387_v45 = vsel %vm2380_vm12, %v2386_v44, 0.0 }
 0x9ec   : > { %2388 = vadd.xlane.f32.xlu0 %v2387_v45 }
 0xa79   : > { %v2389_v48 = vpop.xlane.xlu0 %2388 }
 0xa7a   : > { %v2390_v49 = vmul.f32 0.03125, %v2389_v48 }
 0xa7c   : > { %v2391_v1 = vadd.f32 1e-05, %v2390_v49 }
 0xa7e   : > { %3166 = vrsqrt.f32 %v2391_v1 }
 0xa88   : > { %v3167_v50 = vpop.eup %3166 }
 0xa89   : > { %v2393_v52 = vmul.f32 %v3167_v50, %v2385_v43 }
 0xa8b   : > { %v2394_v54 = vmul.f32 %v2393_v52, %v2378_v51 }
 0xa8d   : > { %v2395_v55 = vadd.f32 %v2394_v54, %v2379_v53 }
 0xa8f   : > { %v2396_v56 = vpack.c.bf16 %v2395_v55, %v2395_v55 }
 0xa91   : > { %3031 = vmatmul.mubr.msk.bf16.vlgmr.msra.gmra.mrb[0].mxu0 %vm869_vm3, %v2396_v56 }
 0xb64   : > { %v2451_v58 = vpop.f32.mrb[0].mxu0 }
 0xb65   : > { %v2452_v59 = vadd.f32 %v2451_v58, %v2401_v57  ;;  %v3032_v60 = vpop.f32.mrb[1].mxu0 }
 0xb66   : > { %v2454_v61 = vpop.f32.mrb[2].mxu0 }
 0xb67   : > { %2457 = vst [vmem:[%s3507_s19] sm:$0x1] %v2452_v59  ;;  %v3033_v62 = vpop.f32.mrb[3].mxu0 }
 0xb68 PF: > { %s3906_s14 = sld [smem:[#allocation9_spill]]  ;;  %s3908_s1 = sld [smem:[#allocation30_spill]] }
 0xb69   : > { %s2471_s15 = sshll.u32 %s3507_s19, 4  ;;  %s3910_s27 = sand.u32 1, %s3238_s28   ;;  %s2472_s15 = int_to_ptr.vmem [resolvable:$true] %s2471_s15 }
 0xb6a   : > { %s2459_s16 = scalar_lea.sflag [#allocation4], %s3910_s27  ;;  %s3168_s22 = scalar_lea.vmem %s2472_s15, 16 }
 0xb6b   : > { %p3169_p2 = scmp.ne.s32.totalorder %s2472_s15, %s3168_s22  ;;  %s3269_s2 = smov [#allocation3]  }
 0xb6c   : > { %s3172_s12 = sshll.u32 %s3269_s2, 4  ;;  %s3173_s12 = int_to_ptr.vmem [resolvable:$false] %s3172_s12 }
 0xb6d   : > { %p3170_p4 = pnand %p3169_p2, %p3414_p3  ;;  %s3174_s26 = scalar_lea.vmem %s3173_s12, 32 }
 0xb6e   : > { %s2758_s21 = sshll.u32 %s3906_s14, 4  ;;  %s3909_s4 = smov %s3908_s1 }
 0xb6f   : > { %s3775_s6 = scalar_lea.hbm %s3908_s1, %s2758_s21  ;;  %p3171_p5 = pneg %p3170_p4 }
 0xb70   : > { %p3175_p6 = scmp.lt.s32.totalorder %s2472_s15, %s3173_s12  ;;  %p3176_p7 = scmp.lt.s32.totalorder %s3174_s26, %s3168_s22 }
 0xb72   : > { %p3177_p8 = por %p3176_p7, %p3175_p6 }
 0xb74   : > { %p3178_p10 = pnand %p3177_p8, %p3171_p5 }
 0xb76   : > { %3181 = shalt.err (!%p3178_p10)
}
 0xb77   : > { %s3182_s19 = scalar_lea.hbm %s3775_s6, 16  ;;  %s3186_s25 = scalar_lea.hbm %s3909_s4, 32 }
 0xb78   : > { %p3183_p11 = scmp.ne.s32.totalorder %s3775_s6, %s3182_s19  ;;  %p3187_p0 = scmp.lt.u32.totalorder %s3775_s6, %s3909_s4 }
 0xb79   : > { %p3188_p1 = scmp.lt.u32.totalorder %s3186_s25, %s3182_s19  ;;  %p3190_p4 = scmp.lt.u32.totalorder %s3182_s19, %s3775_s6 }
 0xb7a   : > { %p3184_p12 = pnand %p3183_p11, %p3414_p3 }
 0xb7b   : > { %p3189_p2 = por %p3188_p1, %p3187_p0 }
 0xb7c   : > { %p3185_p13 = pneg %p3184_p12 }
 0xb7d   : > { %p3191_p5 = por %p3190_p4, %p3189_p2 }
 0xb7f   : > { %p3192_p6 = pnand %p3191_p5, %p3185_p13 }
 0xb81   : > { %3195 = shalt.err (!%p3192_p6)
}
 0xb82   : > { %3034 = dma.vmem_to_hbm [thread:$0]  (%p3414_p3), %s2472_s15, 16, %s3775_s6, %s2459_s16  }
 0xb83 PF: > { %s3911_s29 = sld [smem:[#allocation12_spill]]  ;;  %s3912_s0 = sld [smem:[#allocation6_spill]] }
 0xb89   : > { %p3040_p7 = scmp.ge.s32.totalorder %s3911_s29, 2  ;;  %s2483_s21 = sand.u32 1, %s3912_s0  }
 0xb8a   : > { %s2484_s20 = scalar_lea.sflag [#allocation4], %s2483_s21 }
 0xb8b   : > { %p3037_p8 = pnand %p3040_p7, %p3424_p9 }
 0xb8d   : > { %3229 = dma.done.wait (!%p3037_p8), %s2484_s20, 16  }
 0xb8e   : > { %3231 = vsyncadd (!%p3037_p8), %s2484_s20, 4294967280  ;;  %s31_s20 = sadd.s32 1, %s3911_s29   ;;  %s3914_s3 = sld [smem:[#allocation7_spill]] }
 0xb8f   : > { %p28_p10 = scmp.ge.s32.totalorder %s31_s20, 6   ;;  %s3915_s29 = sld [smem:[#allocation17_spill]] }
 0xb90   : > { %s3916_s30 = sld [smem:[#allocation10_spill]]  ;;  %s3917_s0 = sld [smem:[#allocation11_spill]] }
 0xb91   : > { %s3918_s19 = sld [smem:[#allocation13_spill]]  ;;  %s3919_s1 = sld [smem:[#allocation15_spill]] }
 0xb92   : > { %s3920_s27 = smov %s3238_s28  ;;  %30 = sbr.rel (!%p28_p10) target bundleno = 19 (0x13), region = 174 }
 0xb94   : > { %s3921_s28 = smov %s3914_s3 }
 0xb99   :  { %2488 = vsyncpa [#allocation4], 1 }
 0xb9a   :  { %2490 = vsyncpa [#allocation4 + $0x1], 1 }

</bundles_post_ra>
